<compile_context>
chip_gen: v5e
topology: v5e:2x2
jax: 0.10.0
libtpu: 0.0.40
codegen_flags: <defaults>
</compile_context>

<pallas_src>
from functools import partial

import jax
import jax.numpy as jnp
from jax.experimental import pallas as pl
from jax.experimental.pallas import tpu as pltpu

EPS = 1e-5                      # nn.LayerNorm default
VMEM_LIMIT = 48 * 1024 * 1024   # safe on v7x (64 MiB/TC); raise on v5e/v6e (128 MiB)


def _ln_f32(x, gamma, beta):
    """LayerNorm over last dim with f32 statistics. gamma/beta are (1, D)."""
    mean = jnp.mean(x, axis=-1, keepdims=True)
    var = jnp.mean((x - mean) ** 2, axis=-1, keepdims=True)
    return (x - mean) * jax.lax.rsqrt(var + EPS) * gamma + beta


# ---------------------------------------------------------------------------
# Fused attention block kernel. One grid point = (batch, q-tile).
#   out = x + W_o( softmax( (LN_q(x) Wq)(LN_kv(kv) Wk)^T / sqrt(hd) ) LN_kv(kv) Wv )
# K/V path is computed once per batch (q == 0) and cached in VMEM scratch.
# ---------------------------------------------------------------------------
def attn_block_kernel(x_ref, kv_ref,
                      g_q_ref, b_q_ref, g_kv_ref, b_kv_ref,
                      wq_ref, bq_ref, wkv_ref, bkv_ref, wo_ref, bo_ref,
                      o_ref,
                      qh_scr, kh_scr, vh_scr, ctx_scr,
                      *, nhead, compute_dtype):
    D = x_ref.shape[-1]
    hd = D // nhead
    scale = 1.0 / float(hd) ** 0.5

    # ---- K/V path: LN + one lane-dense (S,D)x(D,2D) matmul, once per batch.
    @pl.when(pl.program_id(1) == 0)
    def _():
        kv = kv_ref[0].astype(jnp.float32)                          # (S, D)
        kvn = _ln_f32(kv, g_kv_ref[...], b_kv_ref[...])
        kvp = jnp.dot(kvn.astype(compute_dtype), wkv_ref[...],       # weights pre-cast
                      preferred_element_type=jnp.float32) + bkv_ref[...]   # (S, 2D)
        kvp = kvp.astype(compute_dtype)
        # Head split via static lane slices into scratch (no 3-D transpose op).
        for h in range(nhead):
            kh_scr[h] = kvp[:, h * hd:(h + 1) * hd]                  # (S, hd)
            vh_scr[h] = kvp[:, D + h * hd:D + (h + 1) * hd]          # (S, hd)

    # ---- Q path (per q tile): LN + one lane-dense (Lq,D)x(D,D) matmul.
    x = x_ref[0].astype(jnp.float32)                                 # (Lq, D) residual
    xn = _ln_f32(x, g_q_ref[...], b_q_ref[...])
    q2 = jnp.dot(xn.astype(compute_dtype), wq_ref[...],
                 preferred_element_type=jnp.float32) + bq_ref[...]   # (Lq, D) f32
    q2 = q2.astype(compute_dtype)
    for h in range(nhead):
        qh_scr[h] = q2[:, h * hd:(h + 1) * hd]                       # (Lq, hd)

    # ---- Scores + softmax (canonical leading-batch einsums, f32 stats).
    s = jnp.einsum("hlc,hsc->hls", qh_scr[...], kh_scr[...],
                   preferred_element_type=jnp.float32) * scale        # (H, Lq, S)
    # TODO(synk): for long S, tile the kv axis with online-softmax (m/l/acc)
    # scratch so VMEM stays bounded (matters on v7x's 64 MiB/TC).
    s = s - jnp.max(s, axis=-1, keepdims=True)
    p = jnp.exp(s)
    l = jnp.sum(p, axis=-1, keepdims=True)
    inv = pl.reciprocal(l, approx=True)           # EUP slot
    inv = inv * (2.0 - l * inv)                   # one Newton step -> exact f32 denom
    p = (p * inv).astype(compute_dtype)

    ctx = jnp.einsum("hls,hsc->hlc", p, vh_scr[...],
                     preferred_element_type=jnp.float32)              # (H, Lq, hd)

    # ---- Lay ctx back lane-dense so the head reduction fuses into one MXU matmul.
    for h in range(nhead):
        ctx_scr[:, h * hd:(h + 1) * hd] = ctx[h].astype(compute_dtype)
    out = jnp.dot(ctx_scr[...], wo_ref[...],
                  preferred_element_type=jnp.float32) + bo_ref[...]   # (Lq, D)

    # Residual fused into the output store.
    o_ref[0] = (x + out).astype(o_ref.dtype)


def attn_block(x, kv, ln_q, ln_kv, w, *, nhead, compute_dtype, block_q=256):
    """x: (B, L, D) residual/query source; kv: (B, S, D) key/value source."""
    B, L, D = x.shape
    S = kv.shape[1]
    hd = D // nhead
    bq = min(block_q, L)
    grid = (B, pl.cdiv(L, bq))
    g_q, b_q = ln_q
    g_kv, b_kv = ln_kv

    # NOTE: weight/bias blocks are grid-invariant; at large d_model mark them
    # pipeline_mode=pl.Buffered(1) to halve their VMEM footprint (trivial here).
    return pl.pallas_call(
        partial(attn_block_kernel, nhead=nhead, compute_dtype=compute_dtype),
        out_shape=jax.ShapeDtypeStruct((B, L, D), x.dtype),
        grid=grid,
        in_specs=[
            pl.BlockSpec((1, bq, D), lambda b, q: (b, q, 0)),        # x tile
            pl.BlockSpec((1, S, D), lambda b, q: (b, 0, 0)),         # kv (q-invariant)
            pl.BlockSpec((1, D), lambda b, q: (0, 0)),               # LN_q gamma
            pl.BlockSpec((1, D), lambda b, q: (0, 0)),               # LN_q beta
            pl.BlockSpec((1, D), lambda b, q: (0, 0)),               # LN_kv gamma
            pl.BlockSpec((1, D), lambda b, q: (0, 0)),               # LN_kv beta
            pl.BlockSpec((D, D), lambda b, q: (0, 0)),               # Wq (pre-cast)
            pl.BlockSpec((1, D), lambda b, q: (0, 0)),               # bq (f32)
            pl.BlockSpec((D, 2 * D), lambda b, q: (0, 0)),           # [Wk|Wv] (pre-cast)
            pl.BlockSpec((1, 2 * D), lambda b, q: (0, 0)),           # [bk|bv] (f32)
            pl.BlockSpec((D, D), lambda b, q: (0, 0)),               # Wo (pre-cast)
            pl.BlockSpec((1, D), lambda b, q: (0, 0)),               # bo (f32)
        ],
        out_specs=pl.BlockSpec((1, bq, D), lambda b, q: (b, q, 0)),
        scratch_shapes=[
            pltpu.VMEM((nhead, bq, hd), compute_dtype),              # Q heads
            pltpu.VMEM((nhead, S, hd), compute_dtype),               # K heads cache
            pltpu.VMEM((nhead, S, hd), compute_dtype),               # V heads cache
            pltpu.VMEM((bq, D), compute_dtype),                      # lane-dense ctx
        ],
        compiler_params=pltpu.CompilerParams(
            dimension_semantics=("parallel", "arbitrary"),
            vmem_limit_bytes=VMEM_LIMIT),
    )(x, kv, g_q, b_q, g_kv, b_kv,
      w["wq"], w["bq"], w["wkv"], w["bkv"], w["wo"], w["bo"])


# ---------------------------------------------------------------------------
# Fused FFN block: out = x + W2 relu(W1 LN(x) + b1) + b2, row-tiled over N.
# ---------------------------------------------------------------------------
def ffn_block_kernel(x_ref, g_ref, b_ref, w1_ref, b1_ref, w2_ref, b2_ref,
                     o_ref, *, compute_dtype):
    x = x_ref[...].astype(jnp.float32)          # (TN, D) residual input
    xn = _ln_f32(x, g_ref[...], b_ref[...])
    h = jnp.dot(xn.astype(compute_dtype), w1_ref[...],
                preferred_element_type=jnp.float32) + b1_ref[...]
    h = jnp.maximum(h, 0.0)                     # relu (ffn_dropout1 = identity)
    y = jnp.dot(h.astype(compute_dtype), w2_ref[...],
                preferred_element_type=jnp.float32) + b2_ref[...]
    o_ref[...] = (x + y).astype(o_ref.dtype)


def ffn_block(x2d, ln, w, *, compute_dtype, block_rows=512):
    # TODO(synk): at real dim_ff on v7x add a reduction grid axis over F (and D
    # for the second matmul) with a VMEM f32 accumulator instead of keeping the
    # full (D,F)/(F,D) weights resident.
    N, D = x2d.shape
    F = w["w1"].shape[1]
    tn = min(block_rows, N)
    grid = (pl.cdiv(N, tn),)
    gamma, beta = ln
    return pl.pallas_call(
        partial(ffn_block_kernel, compute_dtype=compute_dtype),
        out_shape=jax.ShapeDtypeStruct((N, D), x2d.dtype),
        grid=grid,
        in_specs=[
            pl.BlockSpec((tn, D), lambda i: (i, 0)),
            pl.BlockSpec((1, D), lambda i: (0, 0)),
            pl.BlockSpec((1, D), lambda i: (0, 0)),
            pl.BlockSpec((D, F), lambda i: (0, 0)),                  # W1 (pre-cast)
            pl.BlockSpec((1, F), lambda i: (0, 0)),
            pl.BlockSpec((F, D), lambda i: (0, 0)),                  # W2 (pre-cast)
            pl.BlockSpec((1, D), lambda i: (0, 0)),
        ],
        out_specs=pl.BlockSpec((tn, D), lambda i: (i, 0)),
        compiler_params=pltpu.CompilerParams(
            dimension_semantics=("parallel",),
            vmem_limit_bytes=VMEM_LIMIT),
    )(x2d, gamma, beta, w["w1"], w["b1"], w["w2"], w["b2"])


# ---------------------------------------------------------------------------
# One-time parameter prep: relayout + pre-cast weights to compute_dtype.
# (Biases stay f32: they are added to f32 MXU accumulators and are tiny.)
# ---------------------------------------------------------------------------
def prepare_params(p, *, nhead, compute_dtype):
    D = p["sa_wq"].shape[0]
    F = p["l1_w"].shape[1]

    def attn(prefix):
        return {
            "wq": p[f"{prefix}_wq"].astype(compute_dtype),
            "bq": p[f"{prefix}_bq"].reshape(1, D).astype(jnp.float32),
            "wkv": jnp.concatenate([p[f"{prefix}_wk"], p[f"{prefix}_wv"]],
                                   axis=1).astype(compute_dtype),
            "bkv": jnp.concatenate([p[f"{prefix}_bk"], p[f"{prefix}_bv"]]
                                   ).reshape(1, 2 * D).astype(jnp.float32),
            "wo": p[f"{prefix}_wo"].astype(compute_dtype),
            "bo": p[f"{prefix}_bo"].reshape(1, D).astype(jnp.float32),
        }

    def ln(g, b):
        return (p[g].reshape(1, D).astype(jnp.float32),
                p[b].reshape(1, D).astype(jnp.float32))

    return {
        "sa": attn("sa"),
        "ca": attn("ca"),
        "ln1": ln("ln1_g", "ln1_b"),
        "ln21": ln("ln21_g", "ln21_b"),
        "ln22": ln("ln22_g", "ln22_b"),
        "ln3": ln("ln3_g", "ln3_b"),
        "ffn": {
            "w1": p["l1_w"].astype(compute_dtype),
            "b1": p["l1_b"].reshape(1, F).astype(jnp.float32),
            "w2": p["l2_w"].astype(compute_dtype),
            "b2": p["l2_b"].reshape(1, D).astype(jnp.float32),
        },
    }


# ---------------------------------------------------------------------------
# Full TransformerDecoderLayer forward (3 fused pallas_calls).
# ---------------------------------------------------------------------------
def transformer_decoder_layer_batch_first(x, mem, prep, *, nhead,
                                          compute_dtype=jnp.bfloat16,
                                          block_q=256, block_rows=512):
    """x: (B, L, D), mem: (B, S, D). Use this entry point for layer stacks."""
    B, L, D = x.shape
    # tgt2 = tgt + self_attn(norm1(tgt))                (sattn_dropout = identity)
    x2 = attn_block(x, x, prep["ln1"], prep["ln1"], prep["sa"],
                    nhead=nhead, compute_dtype=compute_dtype, block_q=block_q)
    # tgt4 = tgt2 + cross_attn(norm21(tgt2), norm22(memory))
    x4 = attn_block(x2, mem, prep["ln21"], prep["ln22"], prep["ca"],
                    nhead=nhead, compute_dtype=compute_dtype, block_q=block_q)
    # tgt7 = tgt4 + linear2(relu(linear1(norm3(tgt4))))
    x7 = ffn_block(x4.reshape(B * L, D), prep["ln3"], prep["ffn"],
                   compute_dtype=compute_dtype, block_rows=block_rows)
    return x7.reshape(B, L, D)


def transformer_decoder_layer(tgt, memory, prep, *, nhead,
                              compute_dtype=jnp.bfloat16):
    """Seq-first (L, B, D) boundary matching PyTorch nn.MultiheadAttention.
    For multi-layer stacks, transpose once outside and call the batch-first
    entry point per layer instead (avoids per-layer HBM transposes)."""
    x = jnp.transpose(tgt, (1, 0, 2))           # (B, L, D)
    mem = jnp.transpose(memory, (1, 0, 2))      # (B, S, D)
    y = transformer_decoder_layer_batch_first(x, mem, prep, nhead=nhead,
                                              compute_dtype=compute_dtype)
    return jnp.transpose(y, (1, 0, 2))          # back to (L, B, D)


# ---------------------------------------------------------------------------
# Pure-JAX reference (mirrors the kernel's compute_dtype cast points).
# ---------------------------------------------------------------------------
def _ln_ref(x, g, b):
    x = x.astype(jnp.float32)
    m = jnp.mean(x, axis=-1, keepdims=True)
    v = jnp.mean((x - m) ** 2, axis=-1, keepdims=True)
    return (x - m) * jax.lax.rsqrt(v + EPS) * g + b


def _attn_ref(x, kv, gq, bq, gkv, bkv, wq, wk, wv, bqp, bkp, bvp, wo, bo,
              nhead, cdt):
    L, B, D = x.shape
    S = kv.shape[0]
    hd = D // nhead
    xn = _ln_ref(x, gq, bq)
    kvn = _ln_ref(kv, gkv, bkv)
    q = jnp.einsum("lbd,de->lbe", xn.astype(cdt), wq.astype(cdt),
                   preferred_element_type=jnp.float32) + bqp
    k = jnp.einsum("sbd,de->sbe", kvn.astype(cdt), wk.astype(cdt),
                   preferred_element_type=jnp.float32) + bkp
    v = jnp.einsum("sbd,de->sbe", kvn.astype(cdt), wv.astype(cdt),
                   preferred_element_type=jnp.float32) + bvp
    qh = q.reshape(L, B, nhead, hd)
    kh = k.reshape(S, B, nhead, hd)
    vh = v.reshape(S, B, nhead, hd)
    s = jnp.einsum("lbhc,sbhc->bhls", qh.astype(cdt), kh.astype(cdt),
                   preferred_element_type=jnp.float32) * (1.0 / hd ** 0.5)
    pr = jax.nn.softmax(s, axis=-1)
    ctx = jnp.einsum("bhls,sbhc->lbhc", pr.astype(cdt), vh.astype(cdt),
                     preferred_element_type=jnp.float32)
    out = jnp.einsum("lbhc,hcd->lbd", ctx.astype(cdt),
                     wo.reshape(nhead, hd, D).astype(cdt),
                     preferred_element_type=jnp.float32) + bo
    return x + out


def _ffn_ref(x, g, b, w1, b1, w2, b2, cdt):
    xn = _ln_ref(x, g, b)
    h = jnp.einsum("...d,df->...f", xn.astype(cdt), w1.astype(cdt),
                   preferred_element_type=jnp.float32) + b1
    h = jnp.maximum(h, 0.0)
    y = jnp.einsum("...f,fd->...d", h.astype(cdt), w2.astype(cdt),
                   preferred_element_type=jnp.float32) + b2
    return x + y


def _ref_forward(tgt, memory, p, nhead, cdt):
    x2 = _attn_ref(tgt, tgt, p["ln1_g"], p["ln1_b"], p["ln1_g"], p["ln1_b"],
                   p["sa_wq"], p["sa_wk"], p["sa_wv"],
                   p["sa_bq"], p["sa_bk"], p["sa_bv"],
                   p["sa_wo"], p["sa_bo"], nhead, cdt)
    x4 = _attn_ref(x2, memory, p["ln21_g"], p["ln21_b"],
                   p["ln22_g"], p["ln22_b"],
                   p["ca_wq"], p["ca_wk"], p["ca_wv"],
                   p["ca_bq"], p["ca_bk"], p["ca_bv"],
                   p["ca_wo"], p["ca_bo"], nhead, cdt)
    return _ffn_ref(x4, p["ln3_g"], p["ln3_b"],
                    p["l1_w"], p["l1_b"], p["l2_w"], p["l2_b"], cdt)


# ---------------------------------------------------------------------------
def make_params(key, d_model, nhead, dim_ff):
    keys = jax.random.split(key, 20)
    n = lambda k, shape: (0.05 * jax.random.normal(k, shape)).astype(jnp.float32)
    p = {
        # self-attention (weights stored as (in, out))
        "sa_wq": n(keys[0], (d_model, d_model)),
        "sa_wk": n(keys[1], (d_model, d_model)),
        "sa_wv": n(keys[2], (d_model, d_model)),
        "sa_bq": n(keys[3], (d_model,)),
        "sa_bk": n(keys[4], (d_model,)),
        "sa_bv": n(keys[5], (d_model,)),
        "sa_wo": n(keys[6], (d_model, d_model)),
        "sa_bo": n(keys[7], (d_model,)),
        # cross-attention
        "ca_wq": n(keys[8], (d_model, d_model)),
        "ca_wk": n(keys[9], (d_model, d_model)),
        "ca_wv": n(keys[10], (d_model, d_model)),
        "ca_bq": n(keys[11], (d_model,)),
        "ca_bk": n(keys[12], (d_model,)),
        "ca_bv": n(keys[13], (d_model,)),
        "ca_wo": n(keys[14], (d_model, d_model)),
        "ca_bo": n(keys[15], (d_model,)),
        # FFN
        "l1_w": n(keys[16], (d_model, dim_ff)),
        "l1_b": n(keys[17], (dim_ff,)),
        "l2_w": n(keys[18], (dim_ff, d_model)),
        "l2_b": n(keys[19], (d_model,)),
        # layer norms
        "ln1_g": jnp.ones((d_model,), jnp.float32),
        "ln1_b": jnp.zeros((d_model,), jnp.float32),
        "ln21_g": jnp.ones((d_model,), jnp.float32),
        "ln21_b": jnp.zeros((d_model,), jnp.float32),
        "ln22_g": jnp.ones((d_model,), jnp.float32),
        "ln22_b": jnp.zeros((d_model,), jnp.float32),
        "ln3_g": jnp.ones((d_model,), jnp.float32),
        "ln3_b": jnp.zeros((d_model,), jnp.float32),
    }
    return p


if __name__ == "__main__":
    d_model, nhead, dim_ff = 32, 4, 64
    L, S, B = 8, 12, 2
    # NOTE: d_model=32 / head_dim=8 are the module's toy sizes; lane-dense
    # stores and full MXU lanes kick in automatically for d_model >= 128.

    key = jax.random.PRNGKey(0)
    k_tgt, k_mem, k_par = jax.random.split(key, 3)
    tgt = jax.random.normal(k_tgt, (L, B, d_model), jnp.float32)
    memory = jax.random.normal(k_mem, (S, B, d_model), jnp.float32)
    params = make_params(k_par, d_model, nhead, dim_ff)

    # f32 MXU operands (tight check).
    prep_f32 = prepare_params(params, nhead=nhead, compute_dtype=jnp.float32)
    fwd_f32 = jax.jit(partial(transformer_decoder_layer, nhead=nhead,
                              compute_dtype=jnp.float32))
    out_f32 = jax.block_until_ready(fwd_f32(tgt, memory, prep_f32))
    ref_f32 = _ref_forward(tgt, memory, params, nhead, jnp.float32)
    assert out_f32.shape == (L, B, d_model)
    assert jnp.allclose(out_f32, ref_f32, atol=2e-3, rtol=2e-3), \
        "f32 path mismatch vs reference"

    # bf16 MXU operands (recommended default on v5e/v6e/v7x), f32 accumulation,
    # f32 LayerNorm/softmax statistics.
    prep_bf16 = prepare_params(params, nhead=nhead, compute_dtype=jnp.bfloat16)
    fwd_bf16 = jax.jit(partial(transformer_decoder_layer, nhead=nhead,
                               compute_dtype=jnp.bfloat16))
    out_bf16 = jax.block_until_ready(fwd_bf16(tgt, memory, prep_bf16))
    ref_bf16 = _ref_forward(tgt, memory, params, nhead, jnp.bfloat16)
    assert jnp.allclose(out_bf16, ref_bf16, atol=5e-2, rtol=5e-2), \
        "bf16 path mismatch vs reference"

    print("KERNEL_OK")
</pallas_src>

<mosaic_0001>
module attributes {stable_mosaic.version = 11 : i64} {
  func.func @attn_block_kernel(%arg0: i32, %arg1: i32, %arg2: memref<1x8x32xf32, #tpu.memory_space<vmem>>, %arg3: memref<1x8x32xf32, #tpu.memory_space<vmem>>, %arg4: memref<1x32xf32, #tpu.memory_space<vmem>>, %arg5: memref<1x32xf32, #tpu.memory_space<vmem>>, %arg6: memref<1x32xf32, #tpu.memory_space<vmem>>, %arg7: memref<1x32xf32, #tpu.memory_space<vmem>>, %arg8: memref<32x32xf32, #tpu.memory_space<vmem>>, %arg9: memref<1x32xf32, #tpu.memory_space<vmem>>, %arg10: memref<32x64xf32, #tpu.memory_space<vmem>>, %arg11: memref<1x64xf32, #tpu.memory_space<vmem>>, %arg12: memref<32x32xf32, #tpu.memory_space<vmem>>, %arg13: memref<1x32xf32, #tpu.memory_space<vmem>>, %arg14: memref<1x8x32xf32, #tpu.memory_space<vmem>>, %arg15: memref<4x8x8xf32, #tpu.memory_space<vmem>>, %arg16: memref<4x8x8xf32, #tpu.memory_space<vmem>>, %arg17: memref<4x8x8xf32, #tpu.memory_space<vmem>>, %arg18: memref<8x32xf32, #tpu.memory_space<vmem>>) attributes {dimension_semantics = [#tpu.dimension_semantics<parallel>, #tpu.dimension_semantics<arbitrary>], iteration_bounds = array<i64: 2, 1>, scalar_prefetch = 0 : i64, scratch_operands = 4 : i64, tpu.core_type = #tpu.core_type<tc>, window_params = [{transform_indices = @transform_0, window_bounds = array<i64: 1, 8, 32>}, {transform_indices = @transform_1, window_bounds = array<i64: 1, 8, 32>}, {pipeline_mode = #tpu.pipeline_mode<synchronous>, transform_indices = @transform_2, window_bounds = array<i64: 1, 32>}, {pipeline_mode = #tpu.pipeline_mode<synchronous>, transform_indices = @transform_3, window_bounds = array<i64: 1, 32>}, {pipeline_mode = #tpu.pipeline_mode<synchronous>, transform_indices = @transform_4, window_bounds = array<i64: 1, 32>}, {pipeline_mode = #tpu.pipeline_mode<synchronous>, transform_indices = @transform_5, window_bounds = array<i64: 1, 32>}, {pipeline_mode = #tpu.pipeline_mode<synchronous>, transform_indices = @transform_6, window_bounds = array<i64: 32, 32>}, {pipeline_mode = #tpu.pipeline_mode<synchronous>, transform_indices = @transform_7, window_bounds = array<i64: 1, 32>}, {pipeline_mode = #tpu.pipeline_mode<synchronous>, transform_indices = @transform_8, window_bounds = array<i64: 32, 64>}, {pipeline_mode = #tpu.pipeline_mode<synchronous>, transform_indices = @transform_9, window_bounds = array<i64: 1, 64>}, {pipeline_mode = #tpu.pipeline_mode<synchronous>, transform_indices = @transform_10, window_bounds = array<i64: 32, 32>}, {pipeline_mode = #tpu.pipeline_mode<synchronous>, transform_indices = @transform_11, window_bounds = array<i64: 1, 32>}, {transform_indices = @transform_12, window_bounds = array<i64: 1, 8, 32>}]} {
    %c0_i32 = arith.constant 0 : i32
    %0 = arith.cmpi eq, %arg1, %c0_i32 : i32
    %1 = arith.extui %0 : i1 to i32
    %c0_i32_0 = arith.constant 0 : i32
    %2 = arith.cmpi ne, %1, %c0_i32_0 : i32
    scf.if %2 {
      %c0_55 = arith.constant 0 : index
      %c0_56 = arith.constant 0 : index
      %c0_57 = arith.constant 0 : index
      %93 = vector.load %arg3[%c0_55, %c0_56, %c0_57] : memref<1x8x32xf32, #tpu.memory_space<vmem>>, vector<1x8x32xf32>
      %94 = vector.shape_cast %93 : vector<1x8x32xf32> to vector<8x32xf32>
      %c0_58 = arith.constant 0 : index
      %c0_59 = arith.constant 0 : index
      %95 = vector.load %arg6[%c0_58, %c0_59] : memref<1x32xf32, #tpu.memory_space<vmem>>, vector<1x32xf32>
      %c0_60 = arith.constant 0 : index
      %c0_61 = arith.constant 0 : index
      %96 = vector.load %arg7[%c0_60, %c0_61] : memref<1x32xf32, #tpu.memory_space<vmem>>, vector<1x32xf32>
      %cst_62 = arith.constant dense<0.000000e+00> : vector<8xf32>
      %97 = vector.multi_reduction <add>, %94, %cst_62 [1] : vector<8x32xf32> to vector<8xf32>
      %98 = vector.shape_cast %97 : vector<8xf32> to vector<8x1xf32>
      %cst_63 = arith.constant 3.200000e+01 : f32
      %99 = vector.broadcast %cst_63 : f32 to vector<8x1xf32>
      %100 = arith.divf %98, %99 : vector<8x1xf32>
      %101 = vector.broadcast %100 : vector<8x1xf32> to vector<8x32xf32>
      %102 = arith.subf %94, %101 : vector<8x32xf32>
      %103 = arith.mulf %102, %102 : vector<8x32xf32>
      %cst_64 = arith.constant dense<0.000000e+00> : vector<8xf32>
      %104 = vector.multi_reduction <add>, %103, %cst_64 [1] : vector<8x32xf32> to vector<8xf32>
      %105 = vector.shape_cast %104 : vector<8xf32> to vector<8x1xf32>
      %cst_65 = arith.constant 3.200000e+01 : f32
      %106 = vector.broadcast %cst_65 : f32 to vector<8x1xf32>
      %107 = arith.divf %105, %106 : vector<8x1xf32>
      %108 = vector.broadcast %100 : vector<8x1xf32> to vector<8x32xf32>
      %109 = arith.subf %94, %108 : vector<8x32xf32>
      %cst_66 = arith.constant 9.99999974E-6 : f32
      %110 = vector.broadcast %cst_66 : f32 to vector<8x1xf32>
      %111 = arith.addf %107, %110 : vector<8x1xf32>
      %112 = math.rsqrt %111 : vector<8x1xf32>
      %113 = vector.broadcast %112 : vector<8x1xf32> to vector<8x32xf32>
      %114 = arith.mulf %109, %113 : vector<8x32xf32>
      %115 = vector.broadcast %95 : vector<1x32xf32> to vector<8x32xf32>
      %116 = arith.mulf %114, %115 : vector<8x32xf32>
      %117 = vector.broadcast %96 : vector<1x32xf32> to vector<8x32xf32>
      %118 = arith.addf %116, %117 : vector<8x32xf32>
      %c0_67 = arith.constant 0 : index
      %c0_68 = arith.constant 0 : index
      %119 = vector.load %arg10[%c0_67, %c0_68] : memref<32x64xf32, #tpu.memory_space<vmem>>, vector<32x64xf32>
      %cst_69 = arith.constant dense<0.000000e+00> : vector<8x64xf32>
      %120 = tpu.matmul %118, %119, %cst_69 {dimension_numbers = #tpu.dot_dimension_numbers<[1], [0], [0], [1], [0, 0, 1, 1], [], []>} : vector<8x32xf32>, vector<32x64xf32>, vector<8x64xf32> -> vector<8x64xf32>
      %c0_70 = arith.constant 0 : index
      %c0_71 = arith.constant 0 : index
      %121 = vector.load %arg11[%c0_70, %c0_71] : memref<1x64xf32, #tpu.memory_space<vmem>>, vector<1x64xf32>
      %122 = vector.broadcast %121 : vector<1x64xf32> to vector<8x64xf32>
      %123 = arith.addf %120, %122 : vector<8x64xf32>
      %124 = vector.extract_strided_slice %123 {offsets = [0, 0], sizes = [8, 8], strides = [1, 1]} : vector<8x64xf32> to vector<8x8xf32>
      %c0_72 = arith.constant 0 : index
      %c0_73 = arith.constant 0 : index
      %c0_74 = arith.constant 0 : index
      %125 = vector.load %arg16[%c0_72, %c0_73, %c0_74] : memref<4x8x8xf32, #tpu.memory_space<vmem>>, vector<1x8x8xf32>
      %126 = vector.shape_cast %125 : vector<1x8x8xf32> to vector<8x8xf32>
      %127 = vector.shape_cast %124 : vector<8x8xf32> to vector<1x8x8xf32>
      tpu.vector_store %arg16[%c0_72, %c0_73, %c0_74], %127 {strides = array<i32>} : memref<4x8x8xf32, #tpu.memory_space<vmem>>, vector<1x8x8xf32>,
      %128 = vector.extract_strided_slice %123 {offsets = [0, 32], sizes = [8, 8], strides = [1, 1]} : vector<8x64xf32> to vector<8x8xf32>
      %c0_75 = arith.constant 0 : index
      %c0_76 = arith.constant 0 : index
      %c0_77 = arith.constant 0 : index
      %129 = vector.load %arg17[%c0_75, %c0_76, %c0_77] : memref<4x8x8xf32, #tpu.memory_space<vmem>>, vector<1x8x8xf32>
      %130 = vector.shape_cast %129 : vector<1x8x8xf32> to vector<8x8xf32>
      %131 = vector.shape_cast %128 : vector<8x8xf32> to vector<1x8x8xf32>
      tpu.vector_store %arg17[%c0_75, %c0_76, %c0_77], %131 {strides = array<i32>} : memref<4x8x8xf32, #tpu.memory_space<vmem>>, vector<1x8x8xf32>,
      %132 = vector.extract_strided_slice %123 {offsets = [0, 8], sizes = [8, 8], strides = [1, 1]} : vector<8x64xf32> to vector<8x8xf32>
      %c1_78 = arith.constant 1 : index
      %c0_79 = arith.constant 0 : index
      %c0_80 = arith.constant 0 : index
      %133 = vector.load %arg16[%c1_78, %c0_79, %c0_80] : memref<4x8x8xf32, #tpu.memory_space<vmem>>, vector<1x8x8xf32>
      %134 = vector.shape_cast %133 : vector<1x8x8xf32> to vector<8x8xf32>
      %135 = vector.shape_cast %132 : vector<8x8xf32> to vector<1x8x8xf32>
      tpu.vector_store %arg16[%c1_78, %c0_79, %c0_80], %135 {strides = array<i32>} : memref<4x8x8xf32, #tpu.memory_space<vmem>>, vector<1x8x8xf32>,
      %136 = vector.extract_strided_slice %123 {offsets = [0, 40], sizes = [8, 8], strides = [1, 1]} : vector<8x64xf32> to vector<8x8xf32>
      %c1_81 = arith.constant 1 : index
      %c0_82 = arith.constant 0 : index
      %c0_83 = arith.constant 0 : index
      %137 = vector.load %arg17[%c1_81, %c0_82, %c0_83] : memref<4x8x8xf32, #tpu.memory_space<vmem>>, vector<1x8x8xf32>
      %138 = vector.shape_cast %137 : vector<1x8x8xf32> to vector<8x8xf32>
      %139 = vector.shape_cast %136 : vector<8x8xf32> to vector<1x8x8xf32>
      tpu.vector_store %arg17[%c1_81, %c0_82, %c0_83], %139 {strides = array<i32>} : memref<4x8x8xf32, #tpu.memory_space<vmem>>, vector<1x8x8xf32>,
      %140 = vector.extract_strided_slice %123 {offsets = [0, 16], sizes = [8, 8], strides = [1, 1]} : vector<8x64xf32> to vector<8x8xf32>
      %c2_84 = arith.constant 2 : index
      %c0_85 = arith.constant 0 : index
      %c0_86 = arith.constant 0 : index
      %141 = vector.load %arg16[%c2_84, %c0_85, %c0_86] : memref<4x8x8xf32, #tpu.memory_space<vmem>>, vector<1x8x8xf32>
      %142 = vector.shape_cast %141 : vector<1x8x8xf32> to vector<8x8xf32>
      %143 = vector.shape_cast %140 : vector<8x8xf32> to vector<1x8x8xf32>
      tpu.vector_store %arg16[%c2_84, %c0_85, %c0_86], %143 {strides = array<i32>} : memref<4x8x8xf32, #tpu.memory_space<vmem>>, vector<1x8x8xf32>,
      %144 = vector.extract_strided_slice %123 {offsets = [0, 48], sizes = [8, 8], strides = [1, 1]} : vector<8x64xf32> to vector<8x8xf32>
      %c2_87 = arith.constant 2 : index
      %c0_88 = arith.constant 0 : index
      %c0_89 = arith.constant 0 : index
      %145 = vector.load %arg17[%c2_87, %c0_88, %c0_89] : memref<4x8x8xf32, #tpu.memory_space<vmem>>, vector<1x8x8xf32>
      %146 = vector.shape_cast %145 : vector<1x8x8xf32> to vector<8x8xf32>
      %147 = vector.shape_cast %144 : vector<8x8xf32> to vector<1x8x8xf32>
      tpu.vector_store %arg17[%c2_87, %c0_88, %c0_89], %147 {strides = array<i32>} : memref<4x8x8xf32, #tpu.memory_space<vmem>>, vector<1x8x8xf32>,
      %148 = vector.extract_strided_slice %123 {offsets = [0, 24], sizes = [8, 8], strides = [1, 1]} : vector<8x64xf32> to vector<8x8xf32>
      %c3_90 = arith.constant 3 : index
      %c0_91 = arith.constant 0 : index
      %c0_92 = arith.constant 0 : index
      %149 = vector.load %arg16[%c3_90, %c0_91, %c0_92] : memref<4x8x8xf32, #tpu.memory_space<vmem>>, vector<1x8x8xf32>
      %150 = vector.shape_cast %149 : vector<1x8x8xf32> to vector<8x8xf32>
      %151 = vector.shape_cast %148 : vector<8x8xf32> to vector<1x8x8xf32>
      tpu.vector_store %arg16[%c3_90, %c0_91, %c0_92], %151 {strides = array<i32>} : memref<4x8x8xf32, #tpu.memory_space<vmem>>, vector<1x8x8xf32>,
      %152 = vector.extract_strided_slice %123 {offsets = [0, 56], sizes = [8, 8], strides = [1, 1]} : vector<8x64xf32> to vector<8x8xf32>
      %c3_93 = arith.constant 3 : index
      %c0_94 = arith.constant 0 : index
      %c0_95 = arith.constant 0 : index
      %153 = vector.load %arg17[%c3_93, %c0_94, %c0_95] : memref<4x8x8xf32, #tpu.memory_space<vmem>>, vector<1x8x8xf32>
      %154 = vector.shape_cast %153 : vector<1x8x8xf32> to vector<8x8xf32>
      %155 = vector.shape_cast %152 : vector<8x8xf32> to vector<1x8x8xf32>
      tpu.vector_store %arg17[%c3_93, %c0_94, %c0_95], %155 {strides = array<i32>} : memref<4x8x8xf32, #tpu.memory_space<vmem>>, vector<1x8x8xf32>,
    } else {
    }
    %c0 = arith.constant 0 : index
    %c0_1 = arith.constant 0 : index
    %c0_2 = arith.constant 0 : index
    %3 = vector.load %arg2[%c0, %c0_1, %c0_2] : memref<1x8x32xf32, #tpu.memory_space<vmem>>, vector<1x8x32xf32>
    %4 = vector.shape_cast %3 : vector<1x8x32xf32> to vector<8x32xf32>
    %c0_3 = arith.constant 0 : index
    %c0_4 = arith.constant 0 : index
    %5 = vector.load %arg4[%c0_3, %c0_4] : memref<1x32xf32, #tpu.memory_space<vmem>>, vector<1x32xf32>
    %c0_5 = arith.constant 0 : index
    %c0_6 = arith.constant 0 : index
    %6 = vector.load %arg5[%c0_5, %c0_6] : memref<1x32xf32, #tpu.memory_space<vmem>>, vector<1x32xf32>
    %cst = arith.constant dense<0.000000e+00> : vector<8xf32>
    %7 = vector.multi_reduction <add>, %4, %cst [1] : vector<8x32xf32> to vector<8xf32>
    %8 = vector.shape_cast %7 : vector<8xf32> to vector<8x1xf32>
    %cst_7 = arith.constant 3.200000e+01 : f32
    %9 = vector.broadcast %cst_7 : f32 to vector<8x1xf32>
    %10 = arith.divf %8, %9 : vector<8x1xf32>
    %11 = vector.broadcast %10 : vector<8x1xf32> to vector<8x32xf32>
    %12 = arith.subf %4, %11 : vector<8x32xf32>
    %13 = arith.mulf %12, %12 : vector<8x32xf32>
    %cst_8 = arith.constant dense<0.000000e+00> : vector<8xf32>
    %14 = vector.multi_reduction <add>, %13, %cst_8 [1] : vector<8x32xf32> to vector<8xf32>
    %15 = vector.shape_cast %14 : vector<8xf32> to vector<8x1xf32>
    %cst_9 = arith.constant 3.200000e+01 : f32
    %16 = vector.broadcast %cst_9 : f32 to vector<8x1xf32>
    %17 = arith.divf %15, %16 : vector<8x1xf32>
    %18 = vector.broadcast %10 : vector<8x1xf32> to vector<8x32xf32>
    %19 = arith.subf %4, %18 : vector<8x32xf32>
    %cst_10 = arith.constant 9.99999974E-6 : f32
    %20 = vector.broadcast %cst_10 : f32 to vector<8x1xf32>
    %21 = arith.addf %17, %20 : vector<8x1xf32>
    %22 = math.rsqrt %21 : vector<8x1xf32>
    %23 = vector.broadcast %22 : vector<8x1xf32> to vector<8x32xf32>
    %24 = arith.mulf %19, %23 : vector<8x32xf32>
    %25 = vector.broadcast %5 : vector<1x32xf32> to vector<8x32xf32>
    %26 = arith.mulf %24, %25 : vector<8x32xf32>
    %27 = vector.broadcast %6 : vector<1x32xf32> to vector<8x32xf32>
    %28 = arith.addf %26, %27 : vector<8x32xf32>
    %c0_11 = arith.constant 0 : index
    %c0_12 = arith.constant 0 : index
    %29 = vector.load %arg8[%c0_11, %c0_12] : memref<32x32xf32, #tpu.memory_space<vmem>>, vector<32x32xf32>
    %cst_13 = arith.constant dense<0.000000e+00> : vector<8x32xf32>
    %30 = tpu.matmul %28, %29, %cst_13 {dimension_numbers = #tpu.dot_dimension_numbers<[1], [0], [0], [1], [0, 0, 1, 1], [], []>} : vector<8x32xf32>, vector<32x32xf32>, vector<8x32xf32> -> vector<8x32xf32>
    %c0_14 = arith.constant 0 : index
    %c0_15 = arith.constant 0 : index
    %31 = vector.load %arg9[%c0_14, %c0_15] : memref<1x32xf32, #tpu.memory_space<vmem>>, vector<1x32xf32>
    %32 = vector.broadcast %31 : vector<1x32xf32> to vector<8x32xf32>
    %33 = arith.addf %30, %32 : vector<8x32xf32>
    %34 = vector.extract_strided_slice %33 {offsets = [0, 0], sizes = [8, 8], strides = [1, 1]} : vector<8x32xf32> to vector<8x8xf32>
    %c0_16 = arith.constant 0 : index
    %c0_17 = arith.constant 0 : index
    %c0_18 = arith.constant 0 : index
    %35 = vector.load %arg15[%c0_16, %c0_17, %c0_18] : memref<4x8x8xf32, #tpu.memory_space<vmem>>, vector<1x8x8xf32>
    %36 = vector.shape_cast %35 : vector<1x8x8xf32> to vector<8x8xf32>
    %37 = vector.shape_cast %34 : vector<8x8xf32> to vector<1x8x8xf32>
    tpu.vector_store %arg15[%c0_16, %c0_17, %c0_18], %37 {strides = array<i32>} : memref<4x8x8xf32, #tpu.memory_space<vmem>>, vector<1x8x8xf32>,
    %38 = vector.extract_strided_slice %33 {offsets = [0, 8], sizes = [8, 8], strides = [1, 1]} : vector<8x32xf32> to vector<8x8xf32>
    %c1 = arith.constant 1 : index
    %c0_19 = arith.constant 0 : index
    %c0_20 = arith.constant 0 : index
    %39 = vector.load %arg15[%c1, %c0_19, %c0_20] : memref<4x8x8xf32, #tpu.memory_space<vmem>>, vector<1x8x8xf32>
    %40 = vector.shape_cast %39 : vector<1x8x8xf32> to vector<8x8xf32>
    %41 = vector.shape_cast %38 : vector<8x8xf32> to vector<1x8x8xf32>
    tpu.vector_store %arg15[%c1, %c0_19, %c0_20], %41 {strides = array<i32>} : memref<4x8x8xf32, #tpu.memory_space<vmem>>, vector<1x8x8xf32>,
    %42 = vector.extract_strided_slice %33 {offsets = [0, 16], sizes = [8, 8], strides = [1, 1]} : vector<8x32xf32> to vector<8x8xf32>
    %c2 = arith.constant 2 : index
    %c0_21 = arith.constant 0 : index
    %c0_22 = arith.constant 0 : index
    %43 = vector.load %arg15[%c2, %c0_21, %c0_22] : memref<4x8x8xf32, #tpu.memory_space<vmem>>, vector<1x8x8xf32>
    %44 = vector.shape_cast %43 : vector<1x8x8xf32> to vector<8x8xf32>
    %45 = vector.shape_cast %42 : vector<8x8xf32> to vector<1x8x8xf32>
    tpu.vector_store %arg15[%c2, %c0_21, %c0_22], %45 {strides = array<i32>} : memref<4x8x8xf32, #tpu.memory_space<vmem>>, vector<1x8x8xf32>,
    %46 = vector.extract_strided_slice %33 {offsets = [0, 24], sizes = [8, 8], strides = [1, 1]} : vector<8x32xf32> to vector<8x8xf32>
    %c3 = arith.constant 3 : index
    %c0_23 = arith.constant 0 : index
    %c0_24 = arith.constant 0 : index
    %47 = vector.load %arg15[%c3, %c0_23, %c0_24] : memref<4x8x8xf32, #tpu.memory_space<vmem>>, vector<1x8x8xf32>
    %48 = vector.shape_cast %47 : vector<1x8x8xf32> to vector<8x8xf32>
    %49 = vector.shape_cast %46 : vector<8x8xf32> to vector<1x8x8xf32>
    tpu.vector_store %arg15[%c3, %c0_23, %c0_24], %49 {strides = array<i32>} : memref<4x8x8xf32, #tpu.memory_space<vmem>>, vector<1x8x8xf32>,
    %c0_25 = arith.constant 0 : index
    %c0_26 = arith.constant 0 : index
    %c0_27 = arith.constant 0 : index
    %50 = vector.load %arg15[%c0_25, %c0_26, %c0_27] : memref<4x8x8xf32, #tpu.memory_space<vmem>>, vector<4x8x8xf32>
    %c0_28 = arith.constant 0 : index
    %c0_29 = arith.constant 0 : index
    %c0_30 = arith.constant 0 : index
    %51 = vector.load %arg16[%c0_28, %c0_29, %c0_30] : memref<4x8x8xf32, #tpu.memory_space<vmem>>, vector<4x8x8xf32>
    "tpu.trace_start"() <{level = 10 : i32, message = "hlc,hsc->hls"}> : () -> ()
    %cst_31 = arith.constant dense<0.000000e+00> : vector<4x8x8xf32>
    %52 = tpu.matmul %50, %51, %cst_31 {dimension_numbers = #tpu.dot_dimension_numbers<[2], [2], [1], [1], [0, 0, 0, 1, 1, 1], [0], [0]>} : vector<4x8x8xf32>, vector<4x8x8xf32>, vector<4x8x8xf32> -> vector<4x8x8xf32>
    "tpu.trace_stop"() : () -> ()
    %cst_32 = arith.constant 0.353553385 : f32
    %53 = vector.broadcast %cst_32 : f32 to vector<4x8x8xf32>
    %54 = arith.mulf %52, %53 : vector<4x8x8xf32>
    %cst_33 = arith.constant dense<0xFF800000> : vector<4x8xf32>
    %55 = vector.multi_reduction <maximumf>, %54, %cst_33 [2] : vector<4x8x8xf32> to vector<4x8xf32>
    %56 = vector.shape_cast %55 : vector<4x8xf32> to vector<4x8x1xf32>
    %57 = vector.broadcast %56 : vector<4x8x1xf32> to vector<4x8x8xf32>
    %58 = arith.subf %54, %57 : vector<4x8x8xf32>
    %59 = math.exp %58 : vector<4x8x8xf32>
    %cst_34 = arith.constant dense<0.000000e+00> : vector<4x8xf32>
    %60 = vector.multi_reduction <add>, %59, %cst_34 [2] : vector<4x8x8xf32> to vector<4x8xf32>
    %61 = vector.shape_cast %60 : vector<4x8xf32> to vector<4x8x1xf32>
    %62 = tpu.reciprocal %61 {approx = true} : vector<4x8x1xf32> -> vector<4x8x1xf32>
    %63 = arith.mulf %61, %62 : vector<4x8x1xf32>
    %cst_35 = arith.constant 2.000000e+00 : f32
    %64 = vector.broadcast %cst_35 : f32 to vector<4x8x1xf32>
    %65 = arith.subf %64, %63 : vector<4x8x1xf32>
    %66 = arith.mulf %62, %65 : vector<4x8x1xf32>
    %67 = vector.broadcast %66 : vector<4x8x1xf32> to vector<4x8x8xf32>
    %68 = arith.mulf %59, %67 : vector<4x8x8xf32>
    %c0_36 = arith.constant 0 : index
    %c0_37 = arith.constant 0 : index
    %c0_38 = arith.constant 0 : index
    %69 = vector.load %arg17[%c0_36, %c0_37, %c0_38] : memref<4x8x8xf32, #tpu.memory_space<vmem>>, vector<4x8x8xf32>
    "tpu.trace_start"() <{level = 10 : i32, message = "hls,hsc->hlc"}> : () -> ()
    %cst_39 = arith.constant dense<0.000000e+00> : vector<4x8x8xf32>
    %70 = tpu.matmul %68, %69, %cst_39 {dimension_numbers = #tpu.dot_dimension_numbers<[2], [1], [1], [2], [0, 0, 0, 1, 1, 2], [0], [0]>} : vector<4x8x8xf32>, vector<4x8x8xf32>, vector<4x8x8xf32> -> vector<4x8x8xf32>
    "tpu.trace_stop"() : () -> ()
    %71 = vector.extract_strided_slice %70 {offsets = [0, 0, 0], sizes = [1, 8, 8], strides = [1, 1, 1]} : vector<4x8x8xf32> to vector<1x8x8xf32>
    %72 = vector.shape_cast %71 : vector<1x8x8xf32> to vector<8x8xf32>
    %c0_40 = arith.constant 0 : index
    %c0_41 = arith.constant 0 : index
    %73 = vector.load %arg18[%c0_40, %c0_41] : memref<8x32xf32, #tpu.memory_space<vmem>>, vector<8x8xf32>
    tpu.vector_store %arg18[%c0_40, %c0_41], %72 {strides = array<i32>} : memref<8x32xf32, #tpu.memory_space<vmem>>, vector<8x8xf32>,
    %74 = vector.extract_strided_slice %70 {offsets = [1, 0, 0], sizes = [1, 8, 8], strides = [1, 1, 1]} : vector<4x8x8xf32> to vector<1x8x8xf32>
    %75 = vector.shape_cast %74 : vector<1x8x8xf32> to vector<8x8xf32>
    %c0_42 = arith.constant 0 : index
    %c8 = arith.constant 8 : index
    %76 = vector.load %arg18[%c0_42, %c8] : memref<8x32xf32, #tpu.memory_space<vmem>>, vector<8x8xf32>
    tpu.vector_store %arg18[%c0_42, %c8], %75 {strides = array<i32>} : memref<8x32xf32, #tpu.memory_space<vmem>>, vector<8x8xf32>,
    %77 = vector.extract_strided_slice %70 {offsets = [2, 0, 0], sizes = [1, 8, 8], strides = [1, 1, 1]} : vector<4x8x8xf32> to vector<1x8x8xf32>
    %78 = vector.shape_cast %77 : vector<1x8x8xf32> to vector<8x8xf32>
    %c0_43 = arith.constant 0 : index
    %c16 = arith.constant 16 : index
    %79 = vector.load %arg18[%c0_43, %c16] : memref<8x32xf32, #tpu.memory_space<vmem>>, vector<8x8xf32>
    tpu.vector_store %arg18[%c0_43, %c16], %78 {strides = array<i32>} : memref<8x32xf32, #tpu.memory_space<vmem>>, vector<8x8xf32>,
    %80 = vector.extract_strided_slice %70 {offsets = [3, 0, 0], sizes = [1, 8, 8], strides = [1, 1, 1]} : vector<4x8x8xf32> to vector<1x8x8xf32>
    %81 = vector.shape_cast %80 : vector<1x8x8xf32> to vector<8x8xf32>
    %c0_44 = arith.constant 0 : index
    %c24 = arith.constant 24 : index
    %82 = vector.load %arg18[%c0_44, %c24] : memref<8x32xf32, #tpu.memory_space<vmem>>, vector<8x8xf32>
    tpu.vector_store %arg18[%c0_44, %c24], %81 {strides = array<i32>} : memref<8x32xf32, #tpu.memory_space<vmem>>, vector<8x8xf32>,
    %c0_45 = arith.constant 0 : index
    %c0_46 = arith.constant 0 : index
    %83 = vector.load %arg18[%c0_45, %c0_46] : memref<8x32xf32, #tpu.memory_space<vmem>>, vector<8x32xf32>
    %c0_47 = arith.constant 0 : index
    %c0_48 = arith.constant 0 : index
    %84 = vector.load %arg12[%c0_47, %c0_48] : memref<32x32xf32, #tpu.memory_space<vmem>>, vector<32x32xf32>
    %cst_49 = arith.constant dense<0.000000e+00> : vector<8x32xf32>
    %85 = tpu.matmul %83, %84, %cst_49 {dimension_numbers = #tpu.dot_dimension_numbers<[1], [0], [0], [1], [0, 0, 1, 1], [], []>} : vector<8x32xf32>, vector<32x32xf32>, vector<8x32xf32> -> vector<8x32xf32>
    %c0_50 = arith.constant 0 : index
    %c0_51 = arith.constant 0 : index
    %86 = vector.load %arg13[%c0_50, %c0_51] : memref<1x32xf32, #tpu.memory_space<vmem>>, vector<1x32xf32>
    %87 = vector.broadcast %86 : vector<1x32xf32> to vector<8x32xf32>
    %88 = arith.addf %85, %87 : vector<8x32xf32>
    %89 = arith.addf %4, %88 : vector<8x32xf32>
    %c0_52 = arith.constant 0 : index
    %c0_53 = arith.constant 0 : index
    %c0_54 = arith.constant 0 : index
    %90 = vector.load %arg14[%c0_52, %c0_53, %c0_54] : memref<1x8x32xf32, #tpu.memory_space<vmem>>, vector<1x8x32xf32>
    %91 = vector.shape_cast %90 : vector<1x8x32xf32> to vector<8x32xf32>
    %92 = vector.shape_cast %89 : vector<8x32xf32> to vector<1x8x32xf32>
    tpu.vector_store %arg14[%c0_52, %c0_53, %c0_54], %92 {strides = array<i32>} : memref<1x8x32xf32, #tpu.memory_space<vmem>>, vector<1x8x32xf32>,
    return
  }
  func.func @transform_0(%arg0: i32, %arg1: i32) -> (i32, i32, i32) {
    %c0_i32 = arith.constant 0 : i32
    %c0_i32_0 = arith.constant 0 : i32
    return %arg0, %arg1, %c0_i32 : i32, i32, i32
  }
  func.func @transform_1(%arg0: i32, %arg1: i32) -> (i32, i32, i32) {
    %c0_i32 = arith.constant 0 : i32
    %c0_i32_0 = arith.constant 0 : i32
    %c0_i32_1 = arith.constant 0 : i32
    return %arg0, %c0_i32, %c0_i32_0 : i32, i32, i32
  }
  func.func @transform_2(%arg0: i32, %arg1: i32) -> (i32, i32) {
    %c0_i32 = arith.constant 0 : i32
    %c0_i32_0 = arith.constant 0 : i32
    %c0_i32_1 = arith.constant 0 : i32
    return %c0_i32, %c0_i32_0 : i32, i32
  }
  func.func @transform_3(%arg0: i32, %arg1: i32) -> (i32, i32) {
    %c0_i32 = arith.constant 0 : i32
    %c0_i32_0 = arith.constant 0 : i32
    %c0_i32_1 = arith.constant 0 : i32
    return %c0_i32, %c0_i32_0 : i32, i32
  }
  func.func @transform_4(%arg0: i32, %arg1: i32) -> (i32, i32) {
    %c0_i32 = arith.constant 0 : i32
    %c0_i32_0 = arith.constant 0 : i32
    %c0_i32_1 = arith.constant 0 : i32
    return %c0_i32, %c0_i32_0 : i32, i32
  }
  func.func @transform_5(%arg0: i32, %arg1: i32) -> (i32, i32) {
    %c0_i32 = arith.constant 0 : i32
    %c0_i32_0 = arith.constant 0 : i32
    %c0_i32_1 = arith.constant 0 : i32
    return %c0_i32, %c0_i32_0 : i32, i32
  }
  func.func @transform_6(%arg0: i32, %arg1: i32) -> (i32, i32) {
    %c0_i32 = arith.constant 0 : i32
    %c0_i32_0 = arith.constant 0 : i32
    %c0_i32_1 = arith.constant 0 : i32
    return %c0_i32, %c0_i32_0 : i32, i32
  }
  func.func @transform_7(%arg0: i32, %arg1: i32) -> (i32, i32) {
    %c0_i32 = arith.constant 0 : i32
    %c0_i32_0 = arith.constant 0 : i32
    %c0_i32_1 = arith.constant 0 : i32
    return %c0_i32, %c0_i32_0 : i32, i32
  }
  func.func @transform_8(%arg0: i32, %arg1: i32) -> (i32, i32) {
    %c0_i32 = arith.constant 0 : i32
    %c0_i32_0 = arith.constant 0 : i32
    %c0_i32_1 = arith.constant 0 : i32
    return %c0_i32, %c0_i32_0 : i32, i32
  }
  func.func @transform_9(%arg0: i32, %arg1: i32) -> (i32, i32) {
    %c0_i32 = arith.constant 0 : i32
    %c0_i32_0 = arith.constant 0 : i32
    %c0_i32_1 = arith.constant 0 : i32
    return %c0_i32, %c0_i32_0 : i32, i32
  }
  func.func @transform_10(%arg0: i32, %arg1: i32) -> (i32, i32) {
    %c0_i32 = arith.constant 0 : i32
    %c0_i32_0 = arith.constant 0 : i32
    %c0_i32_1 = arith.constant 0 : i32
    return %c0_i32, %c0_i32_0 : i32, i32
  }
  func.func @transform_11(%arg0: i32, %arg1: i32) -> (i32, i32) {
    %c0_i32 = arith.constant 0 : i32
    %c0_i32_0 = arith.constant 0 : i32
    %c0_i32_1 = arith.constant 0 : i32
    return %c0_i32, %c0_i32_0 : i32, i32
  }
  func.func @transform_12(%arg0: i32, %arg1: i32) -> (i32, i32, i32) {
    %c0_i32 = arith.constant 0 : i32
    %c0_i32_0 = arith.constant 0 : i32
    return %arg0, %arg1, %c0_i32 : i32, i32, i32
  }
}

module attributes {stable_mosaic.version = 11 : i64} {
  func.func @attn_block_kernel(%arg0: i32, %arg1: i32, %arg2: memref<1x8x32xf32, #tpu.memory_space<vmem>>, %arg3: memref<1x12x32xf32, #tpu.memory_space<vmem>>, %arg4: memref<1x32xf32, #tpu.memory_space<vmem>>, %arg5: memref<1x32xf32, #tpu.memory_space<vmem>>, %arg6: memref<1x32xf32, #tpu.memory_space<vmem>>, %arg7: memref<1x32xf32, #tpu.memory_space<vmem>>, %arg8: memref<32x32xf32, #tpu.memory_space<vmem>>, %arg9: memref<1x32xf32, #tpu.memory_space<vmem>>, %arg10: memref<32x64xf32, #tpu.memory_space<vmem>>, %arg11: memref<1x64xf32, #tpu.memory_space<vmem>>, %arg12: memref<32x32xf32, #tpu.memory_space<vmem>>, %arg13: memref<1x32xf32, #tpu.memory_space<vmem>>, %arg14: memref<1x8x32xf32, #tpu.memory_space<vmem>>, %arg15: memref<4x8x8xf32, #tpu.memory_space<vmem>>, %arg16: memref<4x12x8xf32, #tpu.memory_space<vmem>>, %arg17: memref<4x12x8xf32, #tpu.memory_space<vmem>>, %arg18: memref<8x32xf32, #tpu.memory_space<vmem>>) attributes {dimension_semantics = [#tpu.dimension_semantics<parallel>, #tpu.dimension_semantics<arbitrary>], iteration_bounds = array<i64: 2, 1>, scalar_prefetch = 0 : i64, scratch_operands = 4 : i64, tpu.core_type = #tpu.core_type<tc>, window_params = [{transform_indices = @transform_0, window_bounds = array<i64: 1, 8, 32>}, {transform_indices = @transform_1, window_bounds = array<i64: 1, 12, 32>}, {pipeline_mode = #tpu.pipeline_mode<synchronous>, transform_indices = @transform_2, window_bounds = array<i64: 1, 32>}, {pipeline_mode = #tpu.pipeline_mode<synchronous>, transform_indices = @transform_3, window_bounds = array<i64: 1, 32>}, {pipeline_mode = #tpu.pipeline_mode<synchronous>, transform_indices = @transform_4, window_bounds = array<i64: 1, 32>}, {pipeline_mode = #tpu.pipeline_mode<synchronous>, transform_indices = @transform_5, window_bounds = array<i64: 1, 32>}, {pipeline_mode = #tpu.pipeline_mode<synchronous>, transform_indices = @transform_6, window_bounds = array<i64: 32, 32>}, {pipeline_mode = #tpu.pipeline_mode<synchronous>, transform_indices = @transform_7, window_bounds = array<i64: 1, 32>}, {pipeline_mode = #tpu.pipeline_mode<synchronous>, transform_indices = @transform_8, window_bounds = array<i64: 32, 64>}, {pipeline_mode = #tpu.pipeline_mode<synchronous>, transform_indices = @transform_9, window_bounds = array<i64: 1, 64>}, {pipeline_mode = #tpu.pipeline_mode<synchronous>, transform_indices = @transform_10, window_bounds = array<i64: 32, 32>}, {pipeline_mode = #tpu.pipeline_mode<synchronous>, transform_indices = @transform_11, window_bounds = array<i64: 1, 32>}, {transform_indices = @transform_12, window_bounds = array<i64: 1, 8, 32>}]} {
    %c0_i32 = arith.constant 0 : i32
    %0 = arith.cmpi eq, %arg1, %c0_i32 : i32
    %1 = arith.extui %0 : i1 to i32
    %c0_i32_0 = arith.constant 0 : i32
    %2 = arith.cmpi ne, %1, %c0_i32_0 : i32
    scf.if %2 {
      %c0_55 = arith.constant 0 : index
      %c0_56 = arith.constant 0 : index
      %c0_57 = arith.constant 0 : index
      %93 = vector.load %arg3[%c0_55, %c0_56, %c0_57] : memref<1x12x32xf32, #tpu.memory_space<vmem>>, vector<1x12x32xf32>
      %94 = vector.shape_cast %93 : vector<1x12x32xf32> to vector<12x32xf32>
      %c0_58 = arith.constant 0 : index
      %c0_59 = arith.constant 0 : index
      %95 = vector.load %arg6[%c0_58, %c0_59] : memref<1x32xf32, #tpu.memory_space<vmem>>, vector<1x32xf32>
      %c0_60 = arith.constant 0 : index
      %c0_61 = arith.constant 0 : index
      %96 = vector.load %arg7[%c0_60, %c0_61] : memref<1x32xf32, #tpu.memory_space<vmem>>, vector<1x32xf32>
      %cst_62 = arith.constant dense<0.000000e+00> : vector<12xf32>
      %97 = vector.multi_reduction <add>, %94, %cst_62 [1] : vector<12x32xf32> to vector<12xf32>
      %98 = vector.shape_cast %97 : vector<12xf32> to vector<12x1xf32>
      %cst_63 = arith.constant 3.200000e+01 : f32
      %99 = vector.broadcast %cst_63 : f32 to vector<12x1xf32>
      %100 = arith.divf %98, %99 : vector<12x1xf32>
      %101 = vector.broadcast %100 : vector<12x1xf32> to vector<12x32xf32>
      %102 = arith.subf %94, %101 : vector<12x32xf32>
      %103 = arith.mulf %102, %102 : vector<12x32xf32>
      %cst_64 = arith.constant dense<0.000000e+00> : vector<12xf32>
      %104 = vector.multi_reduction <add>, %103, %cst_64 [1] : vector<12x32xf32> to vector<12xf32>
      %105 = vector.shape_cast %104 : vector<12xf32> to vector<12x1xf32>
      %cst_65 = arith.constant 3.200000e+01 : f32
      %106 = vector.broadcast %cst_65 : f32 to vector<12x1xf32>
      %107 = arith.divf %105, %106 : vector<12x1xf32>
      %108 = vector.broadcast %100 : vector<12x1xf32> to vector<12x32xf32>
      %109 = arith.subf %94, %108 : vector<12x32xf32>
      %cst_66 = arith.constant 9.99999974E-6 : f32
      %110 = vector.broadcast %cst_66 : f32 to vector<12x1xf32>
      %111 = arith.addf %107, %110 : vector<12x1xf32>
      %112 = math.rsqrt %111 : vector<12x1xf32>
      %113 = vector.broadcast %112 : vector<12x1xf32> to vector<12x32xf32>
      %114 = arith.mulf %109, %113 : vector<12x32xf32>
      %115 = vector.broadcast %95 : vector<1x32xf32> to vector<12x32xf32>
      %116 = arith.mulf %114, %115 : vector<12x32xf32>
      %117 = vector.broadcast %96 : vector<1x32xf32> to vector<12x32xf32>
      %118 = arith.addf %116, %117 : vector<12x32xf32>
      %c0_67 = arith.constant 0 : index
      %c0_68 = arith.constant 0 : index
      %119 = vector.load %arg10[%c0_67, %c0_68] : memref<32x64xf32, #tpu.memory_space<vmem>>, vector<32x64xf32>
      %cst_69 = arith.constant dense<0.000000e+00> : vector<12x64xf32>
      %120 = tpu.matmul %118, %119, %cst_69 {dimension_numbers = #tpu.dot_dimension_numbers<[1], [0], [0], [1], [0, 0, 1, 1], [], []>} : vector<12x32xf32>, vector<32x64xf32>, vector<12x64xf32> -> vector<12x64xf32>
      %c0_70 = arith.constant 0 : index
      %c0_71 = arith.constant 0 : index
      %121 = vector.load %arg11[%c0_70, %c0_71] : memref<1x64xf32, #tpu.memory_space<vmem>>, vector<1x64xf32>
      %122 = vector.broadcast %121 : vector<1x64xf32> to vector<12x64xf32>
      %123 = arith.addf %120, %122 : vector<12x64xf32>
      %124 = vector.extract_strided_slice %123 {offsets = [0, 0], sizes = [12, 8], strides = [1, 1]} : vector<12x64xf32> to vector<12x8xf32>
      %c0_72 = arith.constant 0 : index
      %c0_73 = arith.constant 0 : index
      %c0_74 = arith.constant 0 : index
      %125 = vector.load %arg16[%c0_72, %c0_73, %c0_74] : memref<4x12x8xf32, #tpu.memory_space<vmem>>, vector<1x12x8xf32>
      %126 = vector.shape_cast %125 : vector<1x12x8xf32> to vector<12x8xf32>
      %127 = vector.shape_cast %124 : vector<12x8xf32> to vector<1x12x8xf32>
      tpu.vector_store %arg16[%c0_72, %c0_73, %c0_74], %127 {strides = array<i32>} : memref<4x12x8xf32, #tpu.memory_space<vmem>>, vector<1x12x8xf32>,
      %128 = vector.extract_strided_slice %123 {offsets = [0, 32], sizes = [12, 8], strides = [1, 1]} : vector<12x64xf32> to vector<12x8xf32>
      %c0_75 = arith.constant 0 : index
      %c0_76 = arith.constant 0 : index
      %c0_77 = arith.constant 0 : index
      %129 = vector.load %arg17[%c0_75, %c0_76, %c0_77] : memref<4x12x8xf32, #tpu.memory_space<vmem>>, vector<1x12x8xf32>
      %130 = vector.shape_cast %129 : vector<1x12x8xf32> to vector<12x8xf32>
      %131 = vector.shape_cast %128 : vector<12x8xf32> to vector<1x12x8xf32>
      tpu.vector_store %arg17[%c0_75, %c0_76, %c0_77], %131 {strides = array<i32>} : memref<4x12x8xf32, #tpu.memory_space<vmem>>, vector<1x12x8xf32>,
      %132 = vector.extract_strided_slice %123 {offsets = [0, 8], sizes = [12, 8], strides = [1, 1]} : vector<12x64xf32> to vector<12x8xf32>
      %c1_78 = arith.constant 1 : index
      %c0_79 = arith.constant 0 : index
      %c0_80 = arith.constant 0 : index
      %133 = vector.load %arg16[%c1_78, %c0_79, %c0_80] : memref<4x12x8xf32, #tpu.memory_space<vmem>>, vector<1x12x8xf32>
      %134 = vector.shape_cast %133 : vector<1x12x8xf32> to vector<12x8xf32>
      %135 = vector.shape_cast %132 : vector<12x8xf32> to vector<1x12x8xf32>
      tpu.vector_store %arg16[%c1_78, %c0_79, %c0_80], %135 {strides = array<i32>} : memref<4x12x8xf32, #tpu.memory_space<vmem>>, vector<1x12x8xf32>,
      %136 = vector.extract_strided_slice %123 {offsets = [0, 40], sizes = [12, 8], strides = [1, 1]} : vector<12x64xf32> to vector<12x8xf32>
      %c1_81 = arith.constant 1 : index
      %c0_82 = arith.constant 0 : index
      %c0_83 = arith.constant 0 : index
      %137 = vector.load %arg17[%c1_81, %c0_82, %c0_83] : memref<4x12x8xf32, #tpu.memory_space<vmem>>, vector<1x12x8xf32>
      %138 = vector.shape_cast %137 : vector<1x12x8xf32> to vector<12x8xf32>
      %139 = vector.shape_cast %136 : vector<12x8xf32> to vector<1x12x8xf32>
      tpu.vector_store %arg17[%c1_81, %c0_82, %c0_83], %139 {strides = array<i32>} : memref<4x12x8xf32, #tpu.memory_space<vmem>>, vector<1x12x8xf32>,
      %140 = vector.extract_strided_slice %123 {offsets = [0, 16], sizes = [12, 8], strides = [1, 1]} : vector<12x64xf32> to vector<12x8xf32>
      %c2_84 = arith.constant 2 : index
      %c0_85 = arith.constant 0 : index
      %c0_86 = arith.constant 0 : index
      %141 = vector.load %arg16[%c2_84, %c0_85, %c0_86] : memref<4x12x8xf32, #tpu.memory_space<vmem>>, vector<1x12x8xf32>
      %142 = vector.shape_cast %141 : vector<1x12x8xf32> to vector<12x8xf32>
      %143 = vector.shape_cast %140 : vector<12x8xf32> to vector<1x12x8xf32>
      tpu.vector_store %arg16[%c2_84, %c0_85, %c0_86], %143 {strides = array<i32>} : memref<4x12x8xf32, #tpu.memory_space<vmem>>, vector<1x12x8xf32>,
      %144 = vector.extract_strided_slice %123 {offsets = [0, 48], sizes = [12, 8], strides = [1, 1]} : vector<12x64xf32> to vector<12x8xf32>
      %c2_87 = arith.constant 2 : index
      %c0_88 = arith.constant 0 : index
      %c0_89 = arith.constant 0 : index
      %145 = vector.load %arg17[%c2_87, %c0_88, %c0_89] : memref<4x12x8xf32, #tpu.memory_space<vmem>>, vector<1x12x8xf32>
      %146 = vector.shape_cast %145 : vector<1x12x8xf32> to vector<12x8xf32>
      %147 = vector.shape_cast %144 : vector<12x8xf32> to vector<1x12x8xf32>
      tpu.vector_store %arg17[%c2_87, %c0_88, %c0_89], %147 {strides = array<i32>} : memref<4x12x8xf32, #tpu.memory_space<vmem>>, vector<1x12x8xf32>,
      %148 = vector.extract_strided_slice %123 {offsets = [0, 24], sizes = [12, 8], strides = [1, 1]} : vector<12x64xf32> to vector<12x8xf32>
      %c3_90 = arith.constant 3 : index
      %c0_91 = arith.constant 0 : index
      %c0_92 = arith.constant 0 : index
      %149 = vector.load %arg16[%c3_90, %c0_91, %c0_92] : memref<4x12x8xf32, #tpu.memory_space<vmem>>, vector<1x12x8xf32>
      %150 = vector.shape_cast %149 : vector<1x12x8xf32> to vector<12x8xf32>
      %151 = vector.shape_cast %148 : vector<12x8xf32> to vector<1x12x8xf32>
      tpu.vector_store %arg16[%c3_90, %c0_91, %c0_92], %151 {strides = array<i32>} : memref<4x12x8xf32, #tpu.memory_space<vmem>>, vector<1x12x8xf32>,
      %152 = vector.extract_strided_slice %123 {offsets = [0, 56], sizes = [12, 8], strides = [1, 1]} : vector<12x64xf32> to vector<12x8xf32>
      %c3_93 = arith.constant 3 : index
      %c0_94 = arith.constant 0 : index
      %c0_95 = arith.constant 0 : index
      %153 = vector.load %arg17[%c3_93, %c0_94, %c0_95] : memref<4x12x8xf32, #tpu.memory_space<vmem>>, vector<1x12x8xf32>
      %154 = vector.shape_cast %153 : vector<1x12x8xf32> to vector<12x8xf32>
      %155 = vector.shape_cast %152 : vector<12x8xf32> to vector<1x12x8xf32>
      tpu.vector_store %arg17[%c3_93, %c0_94, %c0_95], %155 {strides = array<i32>} : memref<4x12x8xf32, #tpu.memory_space<vmem>>, vector<1x12x8xf32>,
    } else {
    }
    %c0 = arith.constant 0 : index
    %c0_1 = arith.constant 0 : index
    %c0_2 = arith.constant 0 : index
    %3 = vector.load %arg2[%c0, %c0_1, %c0_2] : memref<1x8x32xf32, #tpu.memory_space<vmem>>, vector<1x8x32xf32>
    %4 = vector.shape_cast %3 : vector<1x8x32xf32> to vector<8x32xf32>
    %c0_3 = arith.constant 0 : index
    %c0_4 = arith.constant 0 : index
    %5 = vector.load %arg4[%c0_3, %c0_4] : memref<1x32xf32, #tpu.memory_space<vmem>>, vector<1x32xf32>
    %c0_5 = arith.constant 0 : index
    %c0_6 = arith.constant 0 : index
    %6 = vector.load %arg5[%c0_5, %c0_6] : memref<1x32xf32, #tpu.memory_space<vmem>>, vector<1x32xf32>
    %cst = arith.constant dense<0.000000e+00> : vector<8xf32>
    %7 = vector.multi_reduction <add>, %4, %cst [1] : vector<8x32xf32> to vector<8xf32>
    %8 = vector.shape_cast %7 : vector<8xf32> to vector<8x1xf32>
    %cst_7 = arith.constant 3.200000e+01 : f32
    %9 = vector.broadcast %cst_7 : f32 to vector<8x1xf32>
    %10 = arith.divf %8, %9 : vector<8x1xf32>
    %11 = vector.broadcast %10 : vector<8x1xf32> to vector<8x32xf32>
    %12 = arith.subf %4, %11 : vector<8x32xf32>
    %13 = arith.mulf %12, %12 : vector<8x32xf32>
    %cst_8 = arith.constant dense<0.000000e+00> : vector<8xf32>
    %14 = vector.multi_reduction <add>, %13, %cst_8 [1] : vector<8x32xf32> to vector<8xf32>
    %15 = vector.shape_cast %14 : vector<8xf32> to vector<8x1xf32>
    %cst_9 = arith.constant 3.200000e+01 : f32
    %16 = vector.broadcast %cst_9 : f32 to vector<8x1xf32>
    %17 = arith.divf %15, %16 : vector<8x1xf32>
    %18 = vector.broadcast %10 : vector<8x1xf32> to vector<8x32xf32>
    %19 = arith.subf %4, %18 : vector<8x32xf32>
    %cst_10 = arith.constant 9.99999974E-6 : f32
    %20 = vector.broadcast %cst_10 : f32 to vector<8x1xf32>
    %21 = arith.addf %17, %20 : vector<8x1xf32>
    %22 = math.rsqrt %21 : vector<8x1xf32>
    %23 = vector.broadcast %22 : vector<8x1xf32> to vector<8x32xf32>
    %24 = arith.mulf %19, %23 : vector<8x32xf32>
    %25 = vector.broadcast %5 : vector<1x32xf32> to vector<8x32xf32>
    %26 = arith.mulf %24, %25 : vector<8x32xf32>
    %27 = vector.broadcast %6 : vector<1x32xf32> to vector<8x32xf32>
    %28 = arith.addf %26, %27 : vector<8x32xf32>
    %c0_11 = arith.constant 0 : index
    %c0_12 = arith.constant 0 : index
    %29 = vector.load %arg8[%c0_11, %c0_12] : memref<32x32xf32, #tpu.memory_space<vmem>>, vector<32x32xf32>
    %cst_13 = arith.constant dense<0.000000e+00> : vector<8x32xf32>
    %30 = tpu.matmul %28, %29, %cst_13 {dimension_numbers = #tpu.dot_dimension_numbers<[1], [0], [0], [1], [0, 0, 1, 1], [], []>} : vector<8x32xf32>, vector<32x32xf32>, vector<8x32xf32> -> vector<8x32xf32>
    %c0_14 = arith.constant 0 : index
    %c0_15 = arith.constant 0 : index
    %31 = vector.load %arg9[%c0_14, %c0_15] : memref<1x32xf32, #tpu.memory_space<vmem>>, vector<1x32xf32>
    %32 = vector.broadcast %31 : vector<1x32xf32> to vector<8x32xf32>
    %33 = arith.addf %30, %32 : vector<8x32xf32>
    %34 = vector.extract_strided_slice %33 {offsets = [0, 0], sizes = [8, 8], strides = [1, 1]} : vector<8x32xf32> to vector<8x8xf32>
    %c0_16 = arith.constant 0 : index
    %c0_17 = arith.constant 0 : index
    %c0_18 = arith.constant 0 : index
    %35 = vector.load %arg15[%c0_16, %c0_17, %c0_18] : memref<4x8x8xf32, #tpu.memory_space<vmem>>, vector<1x8x8xf32>
    %36 = vector.shape_cast %35 : vector<1x8x8xf32> to vector<8x8xf32>
    %37 = vector.shape_cast %34 : vector<8x8xf32> to vector<1x8x8xf32>
    tpu.vector_store %arg15[%c0_16, %c0_17, %c0_18], %37 {strides = array<i32>} : memref<4x8x8xf32, #tpu.memory_space<vmem>>, vector<1x8x8xf32>,
    %38 = vector.extract_strided_slice %33 {offsets = [0, 8], sizes = [8, 8], strides = [1, 1]} : vector<8x32xf32> to vector<8x8xf32>
    %c1 = arith.constant 1 : index
    %c0_19 = arith.constant 0 : index
    %c0_20 = arith.constant 0 : index
    %39 = vector.load %arg15[%c1, %c0_19, %c0_20] : memref<4x8x8xf32, #tpu.memory_space<vmem>>, vector<1x8x8xf32>
    %40 = vector.shape_cast %39 : vector<1x8x8xf32> to vector<8x8xf32>
    %41 = vector.shape_cast %38 : vector<8x8xf32> to vector<1x8x8xf32>
    tpu.vector_store %arg15[%c1, %c0_19, %c0_20], %41 {strides = array<i32>} : memref<4x8x8xf32, #tpu.memory_space<vmem>>, vector<1x8x8xf32>,
    %42 = vector.extract_strided_slice %33 {offsets = [0, 16], sizes = [8, 8], strides = [1, 1]} : vector<8x32xf32> to vector<8x8xf32>
    %c2 = arith.constant 2 : index
    %c0_21 = arith.constant 0 : index
    %c0_22 = arith.constant 0 : index
    %43 = vector.load %arg15[%c2, %c0_21, %c0_22] : memref<4x8x8xf32, #tpu.memory_space<vmem>>, vector<1x8x8xf32>
    %44 = vector.shape_cast %43 : vector<1x8x8xf32> to vector<8x8xf32>
    %45 = vector.shape_cast %42 : vector<8x8xf32> to vector<1x8x8xf32>
    tpu.vector_store %arg15[%c2, %c0_21, %c0_22], %45 {strides = array<i32>} : memref<4x8x8xf32, #tpu.memory_space<vmem>>, vector<1x8x8xf32>,
    %46 = vector.extract_strided_slice %33 {offsets = [0, 24], sizes = [8, 8], strides = [1, 1]} : vector<8x32xf32> to vector<8x8xf32>
    %c3 = arith.constant 3 : index
    %c0_23 = arith.constant 0 : index
    %c0_24 = arith.constant 0 : index
    %47 = vector.load %arg15[%c3, %c0_23, %c0_24] : memref<4x8x8xf32, #tpu.memory_space<vmem>>, vector<1x8x8xf32>
    %48 = vector.shape_cast %47 : vector<1x8x8xf32> to vector<8x8xf32>
    %49 = vector.shape_cast %46 : vector<8x8xf32> to vector<1x8x8xf32>
    tpu.vector_store %arg15[%c3, %c0_23, %c0_24], %49 {strides = array<i32>} : memref<4x8x8xf32, #tpu.memory_space<vmem>>, vector<1x8x8xf32>,
    %c0_25 = arith.constant 0 : index
    %c0_26 = arith.constant 0 : index
    %c0_27 = arith.constant 0 : index
    %50 = vector.load %arg15[%c0_25, %c0_26, %c0_27] : memref<4x8x8xf32, #tpu.memory_space<vmem>>, vector<4x8x8xf32>
    %c0_28 = arith.constant 0 : index
    %c0_29 = arith.constant 0 : index
    %c0_30 = arith.constant 0 : index
    %51 = vector.load %arg16[%c0_28, %c0_29, %c0_30] : memref<4x12x8xf32, #tpu.memory_space<vmem>>, vector<4x12x8xf32>
    "tpu.trace_start"() <{level = 10 : i32, message = "hlc,hsc->hls"}> : () -> ()
    %cst_31 = arith.constant dense<0.000000e+00> : vector<4x8x12xf32>
    %52 = tpu.matmul %50, %51, %cst_31 {dimension_numbers = #tpu.dot_dimension_numbers<[2], [2], [1], [1], [0, 0, 0, 1, 1, 1], [0], [0]>} : vector<4x8x8xf32>, vector<4x12x8xf32>, vector<4x8x12xf32> -> vector<4x8x12xf32>
    "tpu.trace_stop"() : () -> ()
    %cst_32 = arith.constant 0.353553385 : f32
    %53 = vector.broadcast %cst_32 : f32 to vector<4x8x12xf32>
    %54 = arith.mulf %52, %53 : vector<4x8x12xf32>
    %cst_33 = arith.constant dense<0xFF800000> : vector<4x8xf32>
    %55 = vector.multi_reduction <maximumf>, %54, %cst_33 [2] : vector<4x8x12xf32> to vector<4x8xf32>
    %56 = vector.shape_cast %55 : vector<4x8xf32> to vector<4x8x1xf32>
    %57 = vector.broadcast %56 : vector<4x8x1xf32> to vector<4x8x12xf32>
    %58 = arith.subf %54, %57 : vector<4x8x12xf32>
    %59 = math.exp %58 : vector<4x8x12xf32>
    %cst_34 = arith.constant dense<0.000000e+00> : vector<4x8xf32>
    %60 = vector.multi_reduction <add>, %59, %cst_34 [2] : vector<4x8x12xf32> to vector<4x8xf32>
    %61 = vector.shape_cast %60 : vector<4x8xf32> to vector<4x8x1xf32>
    %62 = tpu.reciprocal %61 {approx = true} : vector<4x8x1xf32> -> vector<4x8x1xf32>
    %63 = arith.mulf %61, %62 : vector<4x8x1xf32>
    %cst_35 = arith.constant 2.000000e+00 : f32
    %64 = vector.broadcast %cst_35 : f32 to vector<4x8x1xf32>
    %65 = arith.subf %64, %63 : vector<4x8x1xf32>
    %66 = arith.mulf %62, %65 : vector<4x8x1xf32>
    %67 = vector.broadcast %66 : vector<4x8x1xf32> to vector<4x8x12xf32>
    %68 = arith.mulf %59, %67 : vector<4x8x12xf32>
    %c0_36 = arith.constant 0 : index
    %c0_37 = arith.constant 0 : index
    %c0_38 = arith.constant 0 : index
    %69 = vector.load %arg17[%c0_36, %c0_37, %c0_38] : memref<4x12x8xf32, #tpu.memory_space<vmem>>, vector<4x12x8xf32>
    "tpu.trace_start"() <{level = 10 : i32, message = "hls,hsc->hlc"}> : () -> ()
    %cst_39 = arith.constant dense<0.000000e+00> : vector<4x8x8xf32>
    %70 = tpu.matmul %68, %69, %cst_39 {dimension_numbers = #tpu.dot_dimension_numbers<[2], [1], [1], [2], [0, 0, 0, 1, 1, 2], [0], [0]>} : vector<4x8x12xf32>, vector<4x12x8xf32>, vector<4x8x8xf32> -> vector<4x8x8xf32>
    "tpu.trace_stop"() : () -> ()
    %71 = vector.extract_strided_slice %70 {offsets = [0, 0, 0], sizes = [1, 8, 8], strides = [1, 1, 1]} : vector<4x8x8xf32> to vector<1x8x8xf32>
    %72 = vector.shape_cast %71 : vector<1x8x8xf32> to vector<8x8xf32>
    %c0_40 = arith.constant 0 : index
    %c0_41 = arith.constant 0 : index
    %73 = vector.load %arg18[%c0_40, %c0_41] : memref<8x32xf32, #tpu.memory_space<vmem>>, vector<8x8xf32>
    tpu.vector_store %arg18[%c0_40, %c0_41], %72 {strides = array<i32>} : memref<8x32xf32, #tpu.memory_space<vmem>>, vector<8x8xf32>,
    %74 = vector.extract_strided_slice %70 {offsets = [1, 0, 0], sizes = [1, 8, 8], strides = [1, 1, 1]} : vector<4x8x8xf32> to vector<1x8x8xf32>
    %75 = vector.shape_cast %74 : vector<1x8x8xf32> to vector<8x8xf32>
    %c0_42 = arith.constant 0 : index
    %c8 = arith.constant 8 : index
    %76 = vector.load %arg18[%c0_42, %c8] : memref<8x32xf32, #tpu.memory_space<vmem>>, vector<8x8xf32>
    tpu.vector_store %arg18[%c0_42, %c8], %75 {strides = array<i32>} : memref<8x32xf32, #tpu.memory_space<vmem>>, vector<8x8xf32>,
    %77 = vector.extract_strided_slice %70 {offsets = [2, 0, 0], sizes = [1, 8, 8], strides = [1, 1, 1]} : vector<4x8x8xf32> to vector<1x8x8xf32>
    %78 = vector.shape_cast %77 : vector<1x8x8xf32> to vector<8x8xf32>
    %c0_43 = arith.constant 0 : index
    %c16 = arith.constant 16 : index
    %79 = vector.load %arg18[%c0_43, %c16] : memref<8x32xf32, #tpu.memory_space<vmem>>, vector<8x8xf32>
    tpu.vector_store %arg18[%c0_43, %c16], %78 {strides = array<i32>} : memref<8x32xf32, #tpu.memory_space<vmem>>, vector<8x8xf32>,
    %80 = vector.extract_strided_slice %70 {offsets = [3, 0, 0], sizes = [1, 8, 8], strides = [1, 1, 1]} : vector<4x8x8xf32> to vector<1x8x8xf32>
    %81 = vector.shape_cast %80 : vector<1x8x8xf32> to vector<8x8xf32>
    %c0_44 = arith.constant 0 : index
    %c24 = arith.constant 24 : index
    %82 = vector.load %arg18[%c0_44, %c24] : memref<8x32xf32, #tpu.memory_space<vmem>>, vector<8x8xf32>
    tpu.vector_store %arg18[%c0_44, %c24], %81 {strides = array<i32>} : memref<8x32xf32, #tpu.memory_space<vmem>>, vector<8x8xf32>,
    %c0_45 = arith.constant 0 : index
    %c0_46 = arith.constant 0 : index
    %83 = vector.load %arg18[%c0_45, %c0_46] : memref<8x32xf32, #tpu.memory_space<vmem>>, vector<8x32xf32>
    %c0_47 = arith.constant 0 : index
    %c0_48 = arith.constant 0 : index
    %84 = vector.load %arg12[%c0_47, %c0_48] : memref<32x32xf32, #tpu.memory_space<vmem>>, vector<32x32xf32>
    %cst_49 = arith.constant dense<0.000000e+00> : vector<8x32xf32>
    %85 = tpu.matmul %83, %84, %cst_49 {dimension_numbers = #tpu.dot_dimension_numbers<[1], [0], [0], [1], [0, 0, 1, 1], [], []>} : vector<8x32xf32>, vector<32x32xf32>, vector<8x32xf32> -> vector<8x32xf32>
    %c0_50 = arith.constant 0 : index
    %c0_51 = arith.constant 0 : index
    %86 = vector.load %arg13[%c0_50, %c0_51] : memref<1x32xf32, #tpu.memory_space<vmem>>, vector<1x32xf32>
    %87 = vector.broadcast %86 : vector<1x32xf32> to vector<8x32xf32>
    %88 = arith.addf %85, %87 : vector<8x32xf32>
    %89 = arith.addf %4, %88 : vector<8x32xf32>
    %c0_52 = arith.constant 0 : index
    %c0_53 = arith.constant 0 : index
    %c0_54 = arith.constant 0 : index
    %90 = vector.load %arg14[%c0_52, %c0_53, %c0_54] : memref<1x8x32xf32, #tpu.memory_space<vmem>>, vector<1x8x32xf32>
    %91 = vector.shape_cast %90 : vector<1x8x32xf32> to vector<8x32xf32>
    %92 = vector.shape_cast %89 : vector<8x32xf32> to vector<1x8x32xf32>
    tpu.vector_store %arg14[%c0_52, %c0_53, %c0_54], %92 {strides = array<i32>} : memref<1x8x32xf32, #tpu.memory_space<vmem>>, vector<1x8x32xf32>,
    return
  }
  func.func @transform_0(%arg0: i32, %arg1: i32) -> (i32, i32, i32) {
    %c0_i32 = arith.constant 0 : i32
    %c0_i32_0 = arith.constant 0 : i32
    return %arg0, %arg1, %c0_i32 : i32, i32, i32
  }
  func.func @transform_1(%arg0: i32, %arg1: i32) -> (i32, i32, i32) {
    %c0_i32 = arith.constant 0 : i32
    %c0_i32_0 = arith.constant 0 : i32
    %c0_i32_1 = arith.constant 0 : i32
    return %arg0, %c0_i32, %c0_i32_0 : i32, i32, i32
  }
  func.func @transform_2(%arg0: i32, %arg1: i32) -> (i32, i32) {
    %c0_i32 = arith.constant 0 : i32
    %c0_i32_0 = arith.constant 0 : i32
    %c0_i32_1 = arith.constant 0 : i32
    return %c0_i32, %c0_i32_0 : i32, i32
  }
  func.func @transform_3(%arg0: i32, %arg1: i32) -> (i32, i32) {
    %c0_i32 = arith.constant 0 : i32
    %c0_i32_0 = arith.constant 0 : i32
    %c0_i32_1 = arith.constant 0 : i32
    return %c0_i32, %c0_i32_0 : i32, i32
  }
  func.func @transform_4(%arg0: i32, %arg1: i32) -> (i32, i32) {
    %c0_i32 = arith.constant 0 : i32
    %c0_i32_0 = arith.constant 0 : i32
    %c0_i32_1 = arith.constant 0 : i32
    return %c0_i32, %c0_i32_0 : i32, i32
  }
  func.func @transform_5(%arg0: i32, %arg1: i32) -> (i32, i32) {
    %c0_i32 = arith.constant 0 : i32
    %c0_i32_0 = arith.constant 0 : i32
    %c0_i32_1 = arith.constant 0 : i32
    return %c0_i32, %c0_i32_0 : i32, i32
  }
  func.func @transform_6(%arg0: i32, %arg1: i32) -> (i32, i32) {
    %c0_i32 = arith.constant 0 : i32
    %c0_i32_0 = arith.constant 0 : i32
    %c0_i32_1 = arith.constant 0 : i32
    return %c0_i32, %c0_i32_0 : i32, i32
  }
  func.func @transform_7(%arg0: i32, %arg1: i32) -> (i32, i32) {
    %c0_i32 = arith.constant 0 : i32
    %c0_i32_0 = arith.constant 0 : i32
    %c0_i32_1 = arith.constant 0 : i32
    return %c0_i32, %c0_i32_0 : i32, i32
  }
  func.func @transform_8(%arg0: i32, %arg1: i32) -> (i32, i32) {
    %c0_i32 = arith.constant 0 : i32
    %c0_i32_0 = arith.constant 0 : i32
    %c0_i32_1 = arith.constant 0 : i32
    return %c0_i32, %c0_i32_0 : i32, i32
  }
  func.func @transform_9(%arg0: i32, %arg1: i32) -> (i32, i32) {
    %c0_i32 = arith.constant 0 : i32
    %c0_i32_0 = arith.constant 0 : i32
    %c0_i32_1 = arith.constant 0 : i32
    return %c0_i32, %c0_i32_0 : i32, i32
  }
  func.func @transform_10(%arg0: i32, %arg1: i32) -> (i32, i32) {
    %c0_i32 = arith.constant 0 : i32
    %c0_i32_0 = arith.constant 0 : i32
    %c0_i32_1 = arith.constant 0 : i32
    return %c0_i32, %c0_i32_0 : i32, i32
  }
  func.func @transform_11(%arg0: i32, %arg1: i32) -> (i32, i32) {
    %c0_i32 = arith.constant 0 : i32
    %c0_i32_0 = arith.constant 0 : i32
    %c0_i32_1 = arith.constant 0 : i32
    return %c0_i32, %c0_i32_0 : i32, i32
  }
  func.func @transform_12(%arg0: i32, %arg1: i32) -> (i32, i32, i32) {
    %c0_i32 = arith.constant 0 : i32
    %c0_i32_0 = arith.constant 0 : i32
    return %arg0, %arg1, %c0_i32 : i32, i32, i32
  }
}

module attributes {stable_mosaic.version = 11 : i64} {
  func.func @ffn_block_kernel(%arg0: i32, %arg1: memref<16x32xf32, #tpu.memory_space<vmem>>, %arg2: memref<1x32xf32, #tpu.memory_space<vmem>>, %arg3: memref<1x32xf32, #tpu.memory_space<vmem>>, %arg4: memref<32x64xf32, #tpu.memory_space<vmem>>, %arg5: memref<1x64xf32, #tpu.memory_space<vmem>>, %arg6: memref<64x32xf32, #tpu.memory_space<vmem>>, %arg7: memref<1x32xf32, #tpu.memory_space<vmem>>, %arg8: memref<16x32xf32, #tpu.memory_space<vmem>>) attributes {dimension_semantics = [#tpu.dimension_semantics<parallel>], iteration_bounds = array<i64: 1>, scalar_prefetch = 0 : i64, scratch_operands = 0 : i64, tpu.core_type = #tpu.core_type<tc>, window_params = [{transform_indices = @transform_0, window_bounds = array<i64: 16, 32>}, {pipeline_mode = #tpu.pipeline_mode<synchronous>, transform_indices = @transform_1, window_bounds = array<i64: 1, 32>}, {pipeline_mode = #tpu.pipeline_mode<synchronous>, transform_indices = @transform_2, window_bounds = array<i64: 1, 32>}, {pipeline_mode = #tpu.pipeline_mode<synchronous>, transform_indices = @transform_3, window_bounds = array<i64: 32, 64>}, {pipeline_mode = #tpu.pipeline_mode<synchronous>, transform_indices = @transform_4, window_bounds = array<i64: 1, 64>}, {pipeline_mode = #tpu.pipeline_mode<synchronous>, transform_indices = @transform_5, window_bounds = array<i64: 64, 32>}, {pipeline_mode = #tpu.pipeline_mode<synchronous>, transform_indices = @transform_6, window_bounds = array<i64: 1, 32>}, {transform_indices = @transform_7, window_bounds = array<i64: 16, 32>}]} {
    %c0 = arith.constant 0 : index
    %c0_0 = arith.constant 0 : index
    %0 = vector.load %arg1[%c0, %c0_0] : memref<16x32xf32, #tpu.memory_space<vmem>>, vector<16x32xf32>
    %c0_1 = arith.constant 0 : index
    %c0_2 = arith.constant 0 : index
    %1 = vector.load %arg2[%c0_1, %c0_2] : memref<1x32xf32, #tpu.memory_space<vmem>>, vector<1x32xf32>
    %c0_3 = arith.constant 0 : index
    %c0_4 = arith.constant 0 : index
    %2 = vector.load %arg3[%c0_3, %c0_4] : memref<1x32xf32, #tpu.memory_space<vmem>>, vector<1x32xf32>
    %cst = arith.constant dense<0.000000e+00> : vector<16xf32>
    %3 = vector.multi_reduction <add>, %0, %cst [1] : vector<16x32xf32> to vector<16xf32>
    %4 = vector.shape_cast %3 : vector<16xf32> to vector<16x1xf32>
    %cst_5 = arith.constant 3.200000e+01 : f32
    %5 = vector.broadcast %cst_5 : f32 to vector<16x1xf32>
    %6 = arith.divf %4, %5 : vector<16x1xf32>
    %7 = vector.broadcast %6 : vector<16x1xf32> to vector<16x32xf32>
    %8 = arith.subf %0, %7 : vector<16x32xf32>
    %9 = arith.mulf %8, %8 : vector<16x32xf32>
    %cst_6 = arith.constant dense<0.000000e+00> : vector<16xf32>
    %10 = vector.multi_reduction <add>, %9, %cst_6 [1] : vector<16x32xf32> to vector<16xf32>
    %11 = vector.shape_cast %10 : vector<16xf32> to vector<16x1xf32>
    %cst_7 = arith.constant 3.200000e+01 : f32
    %12 = vector.broadcast %cst_7 : f32 to vector<16x1xf32>
    %13 = arith.divf %11, %12 : vector<16x1xf32>
    %14 = vector.broadcast %6 : vector<16x1xf32> to vector<16x32xf32>
    %15 = arith.subf %0, %14 : vector<16x32xf32>
    %cst_8 = arith.constant 9.99999974E-6 : f32
    %16 = vector.broadcast %cst_8 : f32 to vector<16x1xf32>
    %17 = arith.addf %13, %16 : vector<16x1xf32>
    %18 = math.rsqrt %17 : vector<16x1xf32>
    %19 = vector.broadcast %18 : vector<16x1xf32> to vector<16x32xf32>
    %20 = arith.mulf %15, %19 : vector<16x32xf32>
    %21 = vector.broadcast %1 : vector<1x32xf32> to vector<16x32xf32>
    %22 = arith.mulf %20, %21 : vector<16x32xf32>
    %23 = vector.broadcast %2 : vector<1x32xf32> to vector<16x32xf32>
    %24 = arith.addf %22, %23 : vector<16x32xf32>
    %c0_9 = arith.constant 0 : index
    %c0_10 = arith.constant 0 : index
    %25 = vector.load %arg4[%c0_9, %c0_10] : memref<32x64xf32, #tpu.memory_space<vmem>>, vector<32x64xf32>
    %cst_11 = arith.constant dense<0.000000e+00> : vector<16x64xf32>
    %26 = tpu.matmul %24, %25, %cst_11 {dimension_numbers = #tpu.dot_dimension_numbers<[1], [0], [0], [1], [0, 0, 1, 1], [], []>} : vector<16x32xf32>, vector<32x64xf32>, vector<16x64xf32> -> vector<16x64xf32>
    %c0_12 = arith.constant 0 : index
    %c0_13 = arith.constant 0 : index
    %27 = vector.load %arg5[%c0_12, %c0_13] : memref<1x64xf32, #tpu.memory_space<vmem>>, vector<1x64xf32>
    %28 = vector.broadcast %27 : vector<1x64xf32> to vector<16x64xf32>
    %29 = arith.addf %26, %28 : vector<16x64xf32>
    %cst_14 = arith.constant 0.000000e+00 : f32
    %30 = vector.broadcast %cst_14 : f32 to vector<16x64xf32>
    %31 = arith.maximumf %29, %30 : vector<16x64xf32>
    %c0_15 = arith.constant 0 : index
    %c0_16 = arith.constant 0 : index
    %32 = vector.load %arg6[%c0_15, %c0_16] : memref<64x32xf32, #tpu.memory_space<vmem>>, vector<64x32xf32>
    %cst_17 = arith.constant dense<0.000000e+00> : vector<16x32xf32>
    %33 = tpu.matmul %31, %32, %cst_17 {dimension_numbers = #tpu.dot_dimension_numbers<[1], [0], [0], [1], [0, 0, 1, 1], [], []>} : vector<16x64xf32>, vector<64x32xf32>, vector<16x32xf32> -> vector<16x32xf32>
    %c0_18 = arith.constant 0 : index
    %c0_19 = arith.constant 0 : index
    %34 = vector.load %arg7[%c0_18, %c0_19] : memref<1x32xf32, #tpu.memory_space<vmem>>, vector<1x32xf32>
    %35 = vector.broadcast %34 : vector<1x32xf32> to vector<16x32xf32>
    %36 = arith.addf %33, %35 : vector<16x32xf32>
    %37 = arith.addf %0, %36 : vector<16x32xf32>
    %c0_20 = arith.constant 0 : index
    %c0_21 = arith.constant 0 : index
    %38 = vector.load %arg8[%c0_20, %c0_21] : memref<16x32xf32, #tpu.memory_space<vmem>>, vector<16x32xf32>
    tpu.vector_store %arg8[%c0_20, %c0_21], %37 {strides = array<i32>} : memref<16x32xf32, #tpu.memory_space<vmem>>, vector<16x32xf32>,
    return
  }
  func.func @transform_0(%arg0: i32) -> (i32, i32) {
    %c0_i32 = arith.constant 0 : i32
    %c0_i32_0 = arith.constant 0 : i32
    return %arg0, %c0_i32 : i32, i32
  }
  func.func @transform_1(%arg0: i32) -> (i32, i32) {
    %c0_i32 = arith.constant 0 : i32
    %c0_i32_0 = arith.constant 0 : i32
    %c0_i32_1 = arith.constant 0 : i32
    return %c0_i32, %c0_i32_0 : i32, i32
  }
  func.func @transform_2(%arg0: i32) -> (i32, i32) {
    %c0_i32 = arith.constant 0 : i32
    %c0_i32_0 = arith.constant 0 : i32
    %c0_i32_1 = arith.constant 0 : i32
    return %c0_i32, %c0_i32_0 : i32, i32
  }
  func.func @transform_3(%arg0: i32) -> (i32, i32) {
    %c0_i32 = arith.constant 0 : i32
    %c0_i32_0 = arith.constant 0 : i32
    %c0_i32_1 = arith.constant 0 : i32
    return %c0_i32, %c0_i32_0 : i32, i32
  }
  func.func @transform_4(%arg0: i32) -> (i32, i32) {
    %c0_i32 = arith.constant 0 : i32
    %c0_i32_0 = arith.constant 0 : i32
    %c0_i32_1 = arith.constant 0 : i32
    return %c0_i32, %c0_i32_0 : i32, i32
  }
  func.func @transform_5(%arg0: i32) -> (i32, i32) {
    %c0_i32 = arith.constant 0 : i32
    %c0_i32_0 = arith.constant 0 : i32
    %c0_i32_1 = arith.constant 0 : i32
    return %c0_i32, %c0_i32_0 : i32, i32
  }
  func.func @transform_6(%arg0: i32) -> (i32, i32) {
    %c0_i32 = arith.constant 0 : i32
    %c0_i32_0 = arith.constant 0 : i32
    %c0_i32_1 = arith.constant 0 : i32
    return %c0_i32, %c0_i32_0 : i32, i32
  }
  func.func @transform_7(%arg0: i32) -> (i32, i32) {
    %c0_i32 = arith.constant 0 : i32
    %c0_i32_0 = arith.constant 0 : i32
    return %arg0, %c0_i32 : i32, i32
  }
}

</mosaic_0001>

<bundles_post_ra>
// kernel: transformer_decoder_layer.4
= control target key start
LH: loop header
LB: loop body
LE: loop exit
PB: predicated region body
PF: predicated region fallthrough
CT: control target
= control target key end

     0   :  { %s1807_s0 = inlined_call_operand.vmem [shape: f32[2,8,32], index: 0, kind: input, shape index: {}]   ;;  %s1808_s1 = inlined_call_operand.vmem [shape: f32[2,12,32], index: 1, kind: input, shape index: {}]   ;;  %s1809_s2 = inlined_call_operand.vmem [shape: f32[1,32], index: 2, kind: input, shape index: {}]   ;;  %s1810_s3 = inlined_call_operand.vmem [shape: f32[1,32], index: 3, kind: input, shape index: {}]   ;;  %s1811_s4 = inlined_call_operand.vmem [shape: f32[1,32], index: 4, kind: input, shape index: {}]   ;;  %s1812_s5 = inlined_call_operand.vmem [shape: f32[1,32], index: 5, kind: input, shape index: {}]   ;;  %s1813_s6 = inlined_call_operand.hbm [shape: f32[32,32], index: 6, kind: input, shape index: {}]   ;;  %s1814_s7 = inlined_call_operand.vmem [shape: f32[1,32], index: 7, kind: input, shape index: {}]   ;;  %s1815_s8 = inlined_call_operand.hbm [shape: f32[32,64], index: 8, kind: input, shape index: {}]   ;;  %s1816_s9 = inlined_call_operand.vmem [shape: f32[1,64], index: 9, kind: input, shape index: {}]   ;;  %s1817_s10 = inlined_call_operand.hbm [shape: f32[32,32], index: 10, kind: input, shape index: {}]   ;;  %s1818_s11 = inlined_call_operand.vmem [shape: f32[1,32], index: 11, kind: input, shape index: {}]   ;;  %s1819_s12 = inlined_call_operand.vmem [shape: f32[2,8,32], index: 12, kind: output, shape index: {}]  }
   0x1   :  { %1822 = sst [smem:[#allocation15_spill]] %s1815_s8 }
   0x2   :  { %17 = vsyncpa [#allocation7], 0 }
   0x3   :  { %18 = vsyncpa [#allocation9], 0  ;;  %s1593_s21 = smov 0   ;;  %s1595_s22 = smov 0  }
   0x4   :  { %s1597_s23 = smov 0  }
   0x5 LB: > { %1823 = sst [smem:[#allocation13_spill]] %s1506_s22  ;;  %s1249_s24 = sadd.s32 4294967295, %s1510_s23   ;;  %s1510_s23 = sphi %s1597_s23, %s24_s23   ;;  %s1506_s22 = sphi %s1595_s22, %s1831_s22   ;;  %s1502_s21 = sphi %s1593_s21, %s1830_s21  }
   0x6   : > { %1824 = sst [smem:[#allocation14_spill]] %s1510_s23  ;;  %p1251_p0 = scmp.ge.s32.totalorder %s1510_s23, 1 }
   0x7   : > { %p333_p1 = scmp.lt.s32.totalorder %s1510_s23, 3  ;;  %p1611_p2 = scmp.eq.s32.totalorder %s1249_s24, 0 }
   0x8   : > { %s1826_s8 = sld [smem:[#allocation15_spill]]  ;;  %s1512_s30 = smov [#allocation8]  }
   0x9   : > { %p1618_p3 = pnand %p1251_p0, %p333_p1  ;;  %s375_s13 = sshll.u32 %s1512_s30, 4  ;;  %s376_s13 = int_to_ptr.vmem [resolvable:$true] %s375_s13 }
   0xa   : > { %s36_s15 = sadd.s32 1, %s1506_s22  ;;  %s1513_s16 = smov 128  }
   0xb   : > { %p1303_p4 = pneg %p1618_p3  ;;  %p38_p6 = scmp.ge.s32.totalorder %s36_s15, 2 }
   0xc   : > { %s1514_s17 = smov 8   ;;  %s356_s20 = sshll.u32 %s1813_s6, 4  ;;  %s357_s20 = int_to_ptr.hbm [resolvable:$true] %s356_s20 }
   0xd   : > { %p1626_p5 = pnand %p1611_p2, %p1303_p4  ;;  %s1833_s15 = smov (%p38_p6, %s36_s15), 0 }
   0xe   : > { %s373_s28 = sshll.u32 %s1826_s8, 4  ;;  %s1515_s24 = smov [#allocation6]   ;;  %s374_s28 = int_to_ptr.hbm [resolvable:$true] %s373_s28 }
   0xf   : > { %1309 = dma.hbm_to_vmem [thread:$0]  (!%p1626_p5), %s374_s28, 512, %s376_s13, [#allocation9], %s1513_s16, %s1513_s16, %s1514_s17  }
  0x10   : > { %s358_s26 = sshll.u32 %s1515_s24, 4  ;;  %s390_s8 = sshll.u32 %s1817_s10, 4  ;;  %s359_s26 = int_to_ptr.vmem [resolvable:$true] %s358_s26  ;;  %s391_s8 = int_to_ptr.hbm [resolvable:$true] %s390_s8 }
  0x11   : > { %1306 = dma.hbm_to_vmem [thread:$0]  (!%p1626_p5), %s357_s20, 512, %s359_s26, [#allocation7], %s1513_s16, %s1513_s16, %s1514_s17  }
  0x12   : > { %s1516_s22 = smov [#allocation10]   ;;  %429 = sbr.rel (%p1618_p3) target bundleno = 1369 (0x559), region = 68 }
  0x13   : > { %s392_s23 = sshll.u32 %s1516_s22, 4  ;;  %s393_s23 = int_to_ptr.vmem [resolvable:$true] %s392_s23 }
  0x14   : > { %1312 = dma.hbm_to_vmem [thread:$0]  (!%p1626_p5), %s391_s8, 512, %s393_s23, [#allocation9], %s1513_s16, %s1513_s16, %s1514_s17  }
  0x17   : > { %1493 = dma.done.wait (%p1611_p2), [#allocation7], 512  }
  0x18   : > { %1495 = vsyncadd (%p1611_p2), [#allocation7], 4294966784 }
  0x19   : > { %1497 = dma.done.wait (%p1611_p2), [#allocation9], 1024  }
  0x1a   : > { %1499 = vsyncadd (%p1611_p2), [#allocation9], 4294966272  ;;  %p491_p7 = scmp.lt.s32.totalorder %s1502_s21, 1  ;;  %vm518_vm0 = vcmask 261120   ;;  %vm522_vm1 = vcmask 257024   ;;  %v1517_v6 = vmov 32.0  }
  0x1b   : > { %1366 = vrcp.f32 %v1517_v6  ;;  %v584_v28 = vld [vmem:[#allocation8 + $0x18] sm:$0xff]  ;;  %v583_v29 = vld [vmem:[#allocation8 + $0x10] sm:$0xff]  ;;  %v582_v30 = vld [vmem:[#allocation8 + $0x8] sm:$0xff]  ;;  %vm618_vm12 = vcmask 64512   ;;  %s1518_s23 = smov 104   ;;  %vm620_vm13 = vcmask 60416  }
  0x1c   : > { %s1835_s21 = smov (!%p491_p7, %s1502_s21), 1  ;;  %607 = vmatpush.msra.mxu0 %v584_v28  ;;  %v581_v31 = vld [vmem:[#allocation8] sm:$0xff]  ;;  %v730_v35 = vld [vmem:[#allocation6 + $0x18] sm:$0xff]  ;;  %v729_v36 = vld [vmem:[#allocation6 + $0x10] sm:$0xff]  ;;  %s1519_s28 = smov 120   ;;  %vm908_vm14 = vcmask 97280  }
  0x1d   : > { %s1290_s8 = sshll.u32 %s1835_s21, 4  ;;  %s1260_s22 = sshll.u32 %s1835_s21, 3  ;;  %750 = vmatpush.msra.mxu1 %v730_v35  ;;  %v728_v37 = vld [vmem:[#allocation6 + $0x8] sm:$0xff]  ;;  %v727_v40 = vld [vmem:[#allocation6] sm:$0xff]  ;;  %v1359_v53 = vld [vmem:[%s1811_s4] ss:$0 sm:$0xff] }
  0x1e   : > { %s502_s29 = scalar_lea.vmem %s1808_s1, %s1290_s8  ;;  %s497_s25 = scalar_lea.vmem %s1807_s0, %s1260_s22  ;;  %608 = vmatpush.msra.mxu0 %v583_v29  ;;  %v1360_v57 = vld [vmem:[%s1812_s5] ss:$0 sm:$0xff]  ;;  %vm976_vm15 = vcmask 1043456  }
  0x1f   : > { %v514_v0 = vld [vmem:[%s502_s29] sm:$0xff]  ;;  %v515_v4 = vld [vmem:[%s502_s29 + $0x8] sm:$0xf]  ;;  %751 = vmatpush.msra.mxu1 %v729_v36  ;;  %s1520_s14 = smov 112   ;;  %s1522_s16 = smov 80  }
  0x20   : > { %v1669_v1 = vld [vmem:[%s497_s25] sm:$0xff]  ;;  %v519_v2 = vsel %vm518_vm0, %v514_v0, 0.0  ;;  %v523_v5 = vsel %vm522_vm1, %v515_v4, 0.0  ;;  %609 = vmatpush.msra.mxu0 %v582_v30  ;;  %s1521_s25 = smov 72   ;;  %s1523_s17 = smov 88  }
  0x21   : > { %v690_v3 = vsel %vm518_vm0, %v1669_v1, 0.0  ;;  %520 = vadd.xlane.f32.xlu0 %v519_v2  ;;  %v1367_v7 = vpop.eup %1366  ;;  %752 = vmatpush.msra.mxu1 %v728_v37  ;;  %s1524_s18 = smov 96   ;;  %s1525_s19 = smov 16  }
  0x22   : > { %691 = vadd.xlane.f32.xlu1 %v690_v3  ;;  %v527_v8 = vmul.f32 32.0, %v1367_v7  ;;  %vm531_vm2 = vweird.f32 %v1367_v7  ;;  %610 = vmatpush.msra.mxu0 %v581_v31  ;;  %s1526_s20 = smov 8   ;;  %s1527_s24 = smov 24  }
  0x23   : > { %753 = vmatpush.msra.mxu1 %v727_v40 }
  0x24   : > { %v528_v9 = vsub.f32 1.0, %v527_v8 }
  0x26   : > { %v529_v10 = vmul.f32 %v1367_v7, %v528_v9 }
  0x28   : > { %v530_v11 = vadd.f32 %v1367_v7, %v529_v10  ;;  %v1361_v10 = vld [vmem:[%s1809_s2] ss:$0 sm:$0xff] }
  0x29   : > { %524 = vadd.xlane.f32.xlu0 %v523_v5 }
  0x2a   : > { %v532_v12 = vsel %vm531_vm2, %v1367_v7, %v530_v11  ;;  %vm1089_vm2 = vcmask 195712  }
  0x94   : > { %v521_v13 = vpop.xlane.xlu0 %520 }
  0x95   : > { %v533_v14 = vmul.f32 %v532_v12, %v521_v13  ;;  %v692_v17 = vpop.xlane.xlu1 %691  ;;  %v1362_v13 = vld [vmem:[%s1810_s3] ss:$0 sm:$0xff] }
  0x96   : > { %v700_v21 = vmul.f32 %v692_v17, %v532_v12 }
  0x97   : > { %v535_v15 = vsub.f32 %v514_v0, %v533_v14 }
  0x98   : > { %v1679_v23 = vsub.f32 %v1669_v1, %v700_v21  ;;  %v1364_v21 = vld [vmem:[%s1814_s7] ss:$0 sm:$0xff] }
  0x99   : > { %v537_v16 = vmul.f32 %v535_v15, %v535_v15 }
  0x9a   : > { %v702_v26 = vmul.f32 %v1679_v23, %v1679_v23 }
  0x9b   : > { %v539_v18 = vsel %vm518_vm0, %v537_v16, 0.0  ;;  %v1363_v16 = vld [vmem:[%s1816_s9] ss:$0 sm:$0xff] }
  0x9c   : > { %540 = vadd.xlane.f32.xlu1 %v539_v18  ;;  %v525_v19 = vpop.xlane.xlu0 %524  ;;  %v703_v27 = vsel %vm518_vm0, %v702_v26, 0.0 }
  0x9d   : > { %v534_v20 = vmul.f32 %v532_v12, %v525_v19 }
  0x9f   : > { %v1676_v22 = vsub.f32 %v515_v4, %v534_v20 }
  0xa1   : > { %v538_v24 = vmul.f32 %v1676_v22, %v1676_v22 }
  0xa3   : > { %v542_v25 = vsel %vm522_vm1, %v538_v24, 0.0  ;;  %vm1083_vm1 = vcmask 130112  }
  0xa4   : > { %543 = vadd.xlane.f32.xlu2 %v542_v25 }
  0xac   : > { %704 = vadd.xlane.f32.xlu2 %v703_v27 }
 0x10f   : > { %v541_v32 = vpop.xlane.xlu1 %540 }
 0x110   : > { %v545_v33 = vmul.f32 %v541_v32, %v532_v12 }
 0x112   : > { %v547_v34 = vadd.f32 1e-05, %v545_v33 }
 0x114   : > { %1368 = vrsqrt.f32 %v547_v34  ;;  %vm555_vm4 = vweird.f32 %v547_v34 }
 0x117   : > { %v544_v38 = vpop.xlane.xlu2 %543 }
 0x118   : > { %v546_v39 = vmul.f32 %v544_v38, %v532_v12 }
 0x11a   : > { %v1369_v41 = vpop.eup %1368  ;;  %v548_v42 = vadd.f32 1e-05, %v546_v39 }
 0x11b   : > { %v550_v43 = vmul.f32 %v1369_v41, %v547_v34  ;;  %vm556_vm3 = vweird.f32 %v1369_v41 }
 0x11c   : > { %1370 = vrsqrt.f32 %v548_v42  ;;  %vm557_vm5 = vmor %vm555_vm4, %vm556_vm3  ;;  %vm565_vm7 = vweird.f32 %v548_v42  ;;  %vm1095_vm3 = vcmask 261312  }
 0x11d   : > { %v551_v44 = vmul.f32 %v1369_v41, %v550_v43 }
 0x11f   : > { %v552_v45 = vmul.f32 0.5, %v551_v44  ;;  %v705_v46 = vpop.xlane.xlu2 %704 }
 0x120   : > { %v706_v47 = vmul.f32 %v705_v46, %v532_v12 }
 0x121   : > { %v553_v48 = vsub.f32 1.5, %v552_v45 }
 0x122   : > { %v1371_v49 = vpop.eup %1370  ;;  %v707_v50 = vadd.f32 1e-05, %v706_v47 }
 0x123   : > { %v554_v51 = vmul.f32 %v1369_v41, %v553_v48  ;;  %v560_v52 = vmul.f32 %v1371_v49, %v548_v42  ;;  %vm566_vm6 = vweird.f32 %v1371_v49 }
 0x124   : > { %1372 = vrsqrt.f32 %v707_v50  ;;  %vm567_vm8 = vmor %vm565_vm7, %vm566_vm6  ;;  %vm714_vm9 = vweird.f32 %v707_v50 }
 0x125   : > { %v558_v54 = vsel %vm557_vm5, %v1369_v41, %v554_v51  ;;  %v561_v55 = vmul.f32 %v1371_v49, %v560_v52 }
 0x126   : > { %v569_v56 = vmul.f32 %v558_v54, %v535_v15 }
 0x127   : > { %v562_v58 = vmul.f32 0.5, %v561_v55 }
 0x128   : > { %v574_v59 = vmul.f32 %v1359_v53, %v569_v56 }
 0x129   : > { %v563_v60 = vsub.f32 1.5, %v562_v58 }
 0x12a   : > { %v1373_v61 = vpop.eup %1372  ;;  %v579_v62 = vadd.f32 %v1360_v57, %v574_v59 }
 0x12b   : > { %v564_v63 = vmul.f32 %v1371_v49, %v563_v60  ;;  %v709_v0 = vmul.f32 %v1373_v61, %v707_v50  ;;  %vm715_vm10 = vweird.f32 %v1373_v61 }
 0x12c   : > { %1264 = vmatmul.msk.f32.vlgmr.msra.gmra.mxu0 %vm518_vm0, %v579_v62  ;;  %vm716_vm11 = vmor %vm714_vm9, %vm715_vm10 }
 0x12d   : > { %v568_v2 = vsel %vm567_vm8, %v1371_v49, %v564_v63  ;;  %v710_v3 = vmul.f32 %v1373_v61, %v709_v0 }
 0x12e   : > { %v570_v4 = vmul.f32 %v568_v2, %v1676_v22 }
 0x12f   : > { %v711_v5 = vmul.f32 0.5, %v710_v3 }
 0x130   : > { %v575_v6 = vmul.f32 %v1359_v53, %v570_v4 }
 0x131   : > { %v712_v7 = vsub.f32 1.5, %v711_v5 }
 0x132   : > { %v580_v8 = vadd.f32 %v1360_v57, %v575_v6 }
 0x133   : > { %v713_v9 = vmul.f32 %v1373_v61, %v712_v7 }
 0x134   : > { %1265 = vmatmul.msk.f32.gmra.mxu0 %vm518_vm0, %v580_v8 }
 0x135   : > { %v717_v11 = vsel %vm716_vm11, %v1373_v61, %v713_v9 }
 0x136   : > { %v718_v12 = vmul.f32 %v717_v11, %v1679_v23 }
 0x138   : > { %v722_v14 = vmul.f32 %v1361_v10, %v718_v12 }
 0x13a   : > { %v726_v15 = vadd.f32 %v1362_v13, %v722_v14 }
 0x13c   : > { %1266 = vmatmul.msk.f32.vlgmr.msra.gmra.mxu1 %vm518_vm0, %v726_v15 }
 0x1a9   : > { %v612_v17 = vpop.f32.mrf.mxu0 }
 0x1aa   : > { %v1707_v18 = vadd.f32 %v1363_v16, %v612_v17 }
 0x1ac   : > { %619 = vst.msk [vmem:[#allocation3] sm:$0xff] %vm618_vm12, %v1707_v18  ;;  %668 = vrot.lane.b32.xlu2 %v1707_v18, %s1518_s23 }
 0x1b1   : > { %v615_v19 = vpop.f32.mrf.mxu0 }
 0x1b2   : > { %v1712_v20 = vadd.f32 %v1363_v16, %v615_v19 }
 0x1b3   : > { %v780_v25 = vld [vmem:[#allocation3] sm:$0xff] }
 0x1b4   : > { %632 = vrot.lane.b32.xlu2 %v1707_v18, %s1519_s28  ;;  %634 = vrot.lane.b32.xlu1 %v1712_v20, %s1519_s28  ;;  %621 = vst.msk [vmem:[#allocation3 + $0x8] sm:$0xf] %vm620_vm13, %v1712_v20 }
 0x1b5   : > { %670 = vrot.lane.b32.xlu0 %v1712_v20, %s1518_s23 }
 0x1b9   : > { %v755_v22 = vpop.f32.mrf.mxu1 }
 0x1ba   : > { %v756_v23 = vadd.f32 %v1364_v21, %v755_v22 }
 0x1bb   : > { %v781_v24 = vld [vmem:[#allocation3 + $0x8] sm:$0xf] }
 0x1bc   : > { %759 = vst.msk [vmem:[#allocation2] sm:$0xff] %vm618_vm12, %v756_v23  ;;  %650 = vrot.lane.b32.xlu2 %v1707_v18, %s1520_s14  ;;  %652 = vrot.lane.b32.xlu1 %v1712_v20, %s1520_s14 }
 0x1bd   : > { %1267 = vmatpush.xpose.msk.msra.mxu2 %vm618_vm12, %v781_v24  ;;  %771 = vrot.lane.b32.xlu0 %v756_v23, %s1518_s23  ;;  %s509_s23 = scalar_lea.vmem %s1819_s12, %s1260_s22 }
 0x1c1   : > { %1268 = vmatpush.xpose.msk.msra.mxu2 %vm618_vm12, %v780_v25 }
 0x1c3   : > { %v776_v26 = vld [vmem:[#allocation2] sm:$0xff] }
 0x1c4   : > { %766 = vrot.lane.b32.xlu1 %v756_v23, %s1520_s14  ;;  %1269 = vmatmul.msk.f32.vlgmr.msra.gmra.mxu2 %vm618_vm12, %v776_v26 }
 0x1c5   : > { %761 = vrot.lane.b32.xlu0 %v756_v23, %s1519_s28 }
 0x206   : > { %v669_v27 = vpop.permute.xlu2 %668 }
 0x207   : > { %675 = vst.msk [vmem:[#allocation3 + $0x30] sm:$0xff] %vm618_vm12, %v669_v27 }
 0x20e   : > { %v633_v28 = vpop.permute.xlu2 %632  ;;  %v786_v37 = vld [vmem:[#allocation3 + $0x30] sm:$0xff] }
 0x20f   : > { %639 = vst.msk [vmem:[#allocation3 + $0x10] sm:$0xff] %vm618_vm12, %v633_v28 }
 0x216   : > { %v651_v29 = vpop.permute.xlu2 %650  ;;  %v782_v36 = vld [vmem:[#allocation3 + $0x10] sm:$0xff] }
 0x217   : > { %657 = vst.msk [vmem:[#allocation3 + $0x20] sm:$0xff] %vm618_vm12, %v651_v29 }
 0x21e   : > { %v784_v42 = vld [vmem:[#allocation3 + $0x20] sm:$0xff] }
 0x226   : > { %v635_v30 = vpop.permute.xlu1 %634 }
 0x227   : > { %640 = vst.msk [vmem:[#allocation3 + $0x18] sm:$0xf] %vm620_vm13, %v635_v30  ;;  %v671_v31 = vpop.permute.xlu0 %670 }
 0x228   : > { %676 = vst.msk [vmem:[#allocation3 + $0x38] sm:$0xf] %vm620_vm13, %v671_v31 }
 0x22e   : > { %v653_v32 = vpop.permute.xlu1 %652  ;;  %v783_v33 = vld [vmem:[#allocation3 + $0x18] sm:$0xf] }
 0x22f   : > { %658 = vst.msk [vmem:[#allocation3 + $0x28] sm:$0xf] %vm620_vm13, %v653_v32  ;;  %v772_v34 = vpop.permute.xlu0 %771  ;;  %1270 = vmatpush.xpose.msk.msra.mxu3 %vm618_vm12, %v783_v33  ;;  %v787_v35 = vld [vmem:[#allocation3 + $0x38] sm:$0xf] }
 0x230   : > { %775 = vst.msk [vmem:[#allocation2 + $0x18] sm:$0xff] %vm618_vm12, %v772_v34  ;;  %1276 = vmatpush.xpose.msk.msrb.mxu2 %vm618_vm12, %v787_v35 }
 0x233   : > { %1271 = vmatpush.xpose.msk.msra.mxu3 %vm618_vm12, %v782_v36 }
 0x234   : > { %1277 = vmatpush.xpose.msk.msrb.mxu2 %vm618_vm12, %v786_v37 }
 0x236   : > { %v767_v38 = vpop.permute.xlu1 %766  ;;  %v785_v39 = vld [vmem:[#allocation3 + $0x28] sm:$0xf] }
 0x237   : > { %770 = vst.msk [vmem:[#allocation2 + $0x10] sm:$0xff] %vm618_vm12, %v767_v38  ;;  %v762_v40 = vpop.permute.xlu0 %761  ;;  %1273 = vmatpush.xpose.msk.msrb.mxu1 %vm618_vm12, %v785_v39  ;;  %v779_v41 = vld [vmem:[#allocation2 + $0x18] sm:$0xff] }
 0x238   : > { %765 = vst.msk [vmem:[#allocation2 + $0x8] sm:$0xff] %vm618_vm12, %v762_v40  ;;  %1278 = vmatmul.msk.f32.vlgmr.msrb.gmra.mxu2 %vm618_vm12, %v779_v41 }
 0x23b   : > { %1274 = vmatpush.xpose.msk.msrb.mxu1 %vm618_vm12, %v784_v42 }
 0x23e   : > { %v778_v43 = vld [vmem:[#allocation2 + $0x10] sm:$0xff] }
 0x23f   : > { %v777_v44 = vld [vmem:[#allocation2 + $0x8] sm:$0xff]  ;;  %1275 = vmatmul.msk.f32.vlgmr.msrb.gmra.mxu1 %vm618_vm12, %v778_v43 }
 0x240   : > { %1272 = vmatmul.msk.f32.vlgmr.msra.gmra.mxu3 %vm618_vm12, %v777_v44 }
 0x247   : > { %v814_v45 = vpop.f32.mrf.mxu2 }
 0x248   : > { %v1748_v52 = vmul.f32 0.35355338, %v814_v45 }
 0x24a   : > { %v909_v55 = vsel %vm908_vm14, %v1748_v52, -inf }
 0x2bb   : > { %v901_v46 = vpop.f32.mrf.mxu2 }
 0x2bc   : > { %v907_v47 = vmul.f32 0.35355338, %v901_v46  ;;  %v872_v48 = vpop.f32.mrf.mxu1 }
 0x2bd   : > { %v906_v49 = vmul.f32 0.35355338, %v872_v48 }
 0x2be   : > { %v918_v50 = vsel %vm908_vm14, %v907_v47, -inf }
 0x2bf   : > { %919 = vmax.xlane.f32.xlu0 %v918_v50  ;;  %v915_v51 = vsel %vm908_vm14, %v906_v49, -inf }
 0x2c0   : > { %916 = vmax.xlane.f32.xlu1 %v915_v51 }
 0x2c3   : > { %v843_v53 = vpop.f32.mrf.mxu3 }
 0x2c4   : > { %v905_v54 = vmul.f32 0.35355338, %v843_v53 }
 0x2c6   : > { %v912_v56 = vsel %vm908_vm14, %v905_v54, -inf }
 0x2c7   : > { %910 = vmax.xlane.f32.xlu0 %v909_v55  ;;  %913 = vmax.xlane.f32.xlu2 %v912_v56 }
 0x2d9   : > { %677 = vrot.lane.b32.xlu1 %v1707_v18, %s1521_s25 }
 0x2db   : > { %679 = vrot.lane.b32.xlu0 %v1712_v20, %s1521_s25 }
 0x2e1   : > { %659 = vrot.lane.b32.xlu1 %v1707_v18, %s1522_s16 }
 0x2e3   : > { %661 = vrot.lane.b32.xlu0 %v1712_v20, %s1522_s16 }
 0x2eb   : > { %641 = vrot.lane.b32.xlu0 %v1707_v18, %s1523_s17 }
 0x2f3   : > { %626 = vrot.lane.b32.xlu0 %v1712_v20, %s1524_s18 }
 0x332   : > { %v920_v57 = vpop.xlane.xlu0 %919 }
 0x333   : > { %v917_v58 = vpop.xlane.xlu1 %916  ;;  %v924_v60 = vsub.f32 %v907_v47, %v920_v57 }
 0x334   : > { %v923_v59 = vsub.f32 %v906_v49, %v917_v58  ;;  %v1101_v58 = vld [vmem:[#allocation10 + $0x18] sm:$0xff] }
 0x335   : > { %v931_v62 = vmul.f32 1.442695, %v924_v60  ;;  %v1099_v60 = vld [vmem:[#allocation10 + $0x8] sm:$0xff] }
 0x336   : > { %v929_v61 = vmul.f32 1.442695, %v923_v59  ;;  %v1100_v59 = vld [vmem:[#allocation10 + $0x10] sm:$0xff] }
 0x338   : > { %1374 = vpow2.f32 %v929_v61  ;;  %v1098_v61 = vld [vmem:[#allocation10] sm:$0xff] }
 0x339   : > { %1376 = vpow2.f32 %v931_v62 }
 0x33a   : > { %v914_v63 = vpop.xlane.xlu2 %913  ;;  %v911_v6 = vpop.xlane.xlu0 %910 }
 0x33b   : > { %v922_v0 = vsub.f32 %v905_v54, %v914_v63  ;;  %v921_v23 = vsub.f32 %v1748_v52, %v911_v6 }
 0x33d   : > { %v927_v2 = vmul.f32 1.442695, %v922_v0  ;;  %v925_v24 = vmul.f32 1.442695, %v921_v23 }
 0x33e   : > { %v1375_v3 = vpop.eup %1374 }
 0x33f   : > { %v939_v4 = vsel %vm908_vm14, %v1375_v3, 0.0  ;;  %1378 = vpow2.f32 %v927_v2  ;;  %v1377_v5 = vpop.eup %1376 }
 0x340   : > { %940 = vadd.xlane.f32.xlu2 %v939_v4  ;;  %v942_v9 = vsel %vm908_vm14, %v1377_v5, 0.0  ;;  %1380 = vpow2.f32 %v925_v24 }
 0x345   : > { %v1379_v7 = vpop.eup %1378 }
 0x346   : > { %v936_v8 = vsel %vm908_vm14, %v1379_v7, 0.0  ;;  %v1381_v25 = vpop.eup %1380 }
 0x347   : > { %937 = vadd.xlane.f32.xlu1 %v936_v8  ;;  %v933_v26 = vsel %vm908_vm14, %v1381_v25, 0.0 }
 0x348   : > { %943 = vadd.xlane.f32.xlu2 %v942_v9 }
 0x34b   : > { %v678_v10 = vpop.permute.xlu1 %677 }
 0x34c   : > { %684 = vst.msk [vmem:[#allocation4 + $0x30] sm:$0xff] %vm618_vm12, %v678_v10 }
 0x34d   : > { %v680_v11 = vpop.permute.xlu0 %679 }
 0x34e   : > { %685 = vst.msk [vmem:[#allocation4 + $0x38] sm:$0xf] %vm620_vm13, %v680_v11 }
 0x353   : > { %v660_v12 = vpop.permute.xlu1 %659  ;;  %v971_v15 = vld [vmem:[#allocation4 + $0x30] sm:$0xff] }
 0x354   : > { %666 = vst.msk [vmem:[#allocation4 + $0x20] sm:$0xff] %vm618_vm12, %v660_v12 }
 0x355   : > { %v662_v13 = vpop.permute.xlu0 %661  ;;  %v972_v14 = vld [vmem:[#allocation4 + $0x38] sm:$0xf] }
 0x356   : > { %667 = vst.msk [vmem:[#allocation4 + $0x28] sm:$0xf] %vm620_vm13, %v662_v13  ;;  %1285 = vmatpush.msk.msra.mxu2 %vm976_vm15, %v972_v14 }
 0x358   : > { %1073 = vmatpush.msra.mxu2 %v971_v15 }
 0x35b   : > { %v969_v19 = vld [vmem:[#allocation4 + $0x20] sm:$0xff] }
 0x35d   : > { %v642_v16 = vpop.permute.xlu0 %641  ;;  %v970_v17 = vld [vmem:[#allocation4 + $0x28] sm:$0xf] }
 0x35e   : > { %648 = vst.msk [vmem:[#allocation4 + $0x10] sm:$0xff] %vm618_vm12, %v642_v16  ;;  %1283 = vmatpush.msk.msra.mxu1 %vm976_vm15, %v970_v17 }
 0x360   : > { %1047 = vmatpush.msra.mxu1 %v969_v19  ;;  %643 = vrot.lane.b32.xlu2 %v1712_v20, %s1523_s17 }
 0x361   : > { %624 = vrot.lane.b32.xlu1 %v1707_v18, %s1524_s18 }
 0x365   : > { %v627_v21 = vpop.permute.xlu0 %626  ;;  %v967_v45 = vld [vmem:[#allocation4 + $0x10] sm:$0xff] }
 0x366   : > { %631 = vst.msk [vmem:[#allocation4 + $0x8] sm:$0xf] %vm620_vm13, %v627_v21 }
 0x36d   : > { %v966_v22 = vld [vmem:[#allocation4 + $0x8] sm:$0xf] }
 0x36e   : > { %1279 = vmatpush.msk.msrb.mxu3 %vm976_vm15, %v966_v22 }
 0x389   : > { %934 = vadd.xlane.f32.xlu2 %v933_v26 }
 0x3b3   : > { %v941_v27 = vpop.xlane.xlu2 %940 }
 0x3b4   : > { %1382 = vrcp.f32 %v941_v27 }
 0x3ba   : > { %v1383_v20 = vpop.eup %1382  ;;  %v938_v29 = vpop.xlane.xlu1 %937 }
 0x3bb   : > { %v951_v28 = vmul.f32 %v1383_v20, %v941_v27  ;;  %v944_v18 = vpop.xlane.xlu2 %943  ;;  %1384 = vrcp.f32 %v938_v29 }
 0x3bc   : > { %1386 = vrcp.f32 %v944_v18 }
 0x3bd   : > { %v955_v30 = vsub.f32 2.0, %v951_v28 }
 0x3bf   : > { %v959_v31 = vmul.f32 %v1383_v20, %v955_v30 }
 0x3c1   : > { %v963_v32 = vmul.f32 %v1375_v3, %v959_v31  ;;  %v1385_v33 = vpop.eup %1384  ;;  %v1365_v3 = vld [vmem:[%s1818_s11] ss:$0 sm:$0xff] }
 0x3c2   : > { %v1387_v34 = vpop.eup %1386  ;;  %v950_v35 = vmul.f32 %v1385_v33, %v938_v29 }
 0x3c3   : > { %1284 = vmatmul.msk.f32.vlgmr.msra.gmra.mxu1 %vm908_vm14, %v963_v32  ;;  %v644_v36 = vpop.permute.xlu2 %643  ;;  %v952_v37 = vmul.f32 %v1387_v34, %v944_v18 }
 0x3c4   : > { %649 = vst.msk [vmem:[#allocation4 + $0x18] sm:$0xf] %vm620_vm13, %v644_v36  ;;  %v954_v38 = vsub.f32 2.0, %v950_v35 }
 0x3c5   : > { %v956_v39 = vsub.f32 2.0, %v952_v37 }
 0x3c6   : > { %v958_v41 = vmul.f32 %v1385_v33, %v954_v38 }
 0x3c7   : > { %v960_v40 = vmul.f32 %v1387_v34, %v956_v39 }
 0x3c8   : > { %v962_v44 = vmul.f32 %v1379_v7, %v958_v41 }
 0x3c9   : > { %v964_v42 = vmul.f32 %v1377_v5, %v960_v40 }
 0x3cb   : > { %v968_v43 = vld [vmem:[#allocation4 + $0x18] sm:$0xf]  ;;  %1286 = vmatmul.msk.f32.vlgmr.msra.gmra.mxu2 %vm908_vm14, %v964_v42 }
 0x3cc   : > { %1281 = vmatpush.msk.msrb.mxu0 %vm976_vm15, %v968_v43 }
 0x3ce   : > { %1021 = vmatpush.msrb.mxu0 %v967_v45 }
 0x3cf   : > { %1282 = vmatmul.msk.f32.vlgmr.msrb.gmra.mxu0 %vm908_vm14, %v962_v44 }
 0x3d3   : > { %v625_v46 = vpop.permute.xlu1 %624 }
 0x3d4   : > { %630 = vst.msk [vmem:[#allocation4] sm:$0xff] %vm618_vm12, %v625_v46 }
 0x3db   : > { %v965_v47 = vld [vmem:[#allocation4] sm:$0xff] }
 0x3dc   : > { %995 = vmatpush.msrb.mxu3 %v965_v47 }
 0x3de   : > { %1121 = vmatpush.msra.mxu3 %v1101_v58 }
 0x3e0   : > { %1122 = vmatpush.msra.mxu3 %v1100_v59 }
 0x3e2   : > { %1123 = vmatpush.msra.mxu3 %v1099_v60 }
 0x3e4   : > { %1124 = vmatpush.msra.mxu3 %v1098_v61 }
 0x3fc   : > { %v935_v48 = vpop.xlane.xlu2 %934 }
 0x3fd   : > { %1388 = vrcp.f32 %v935_v48 }
 0x403   : > { %v1389_v49 = vpop.eup %1388 }
 0x404   : > { %v949_v50 = vmul.f32 %v1389_v49, %v935_v48 }
 0x406   : > { %v953_v51 = vsub.f32 2.0, %v949_v50 }
 0x408   : > { %v957_v52 = vmul.f32 %v1389_v49, %v953_v51 }
 0x40a   : > { %v961_v53 = vmul.f32 %v1381_v25, %v957_v52 }
 0x40c   : > { %1280 = vmatmul.msk.f32.vlgmr.msrb.gmra.mxu3 %vm908_vm14, %v961_v53 }
 0x440   : > { %v1049_v54 = vpop.f32.mrf.mxu1 }
 0x441   : > { %1086 = vrot.lane.b32.xlu1 %v1049_v54, %s1525_s19 }
 0x44c   : > { %v1023_v55 = vpop.f32.mrf.mxu0 }
 0x44d   : > { %1080 = vrot.lane.b32.xlu0 %v1023_v55, %s1526_s20 }
 0x44e   : > { %v1075_v56 = vpop.f32.mrf.mxu2 }
 0x455   : > { %1092 = vrot.lane.b32.xlu0 %v1075_v56, %s1527_s24 }
 0x48f   : > { %v997_v57 = vpop.f32.mrf.mxu3 }
 0x490   : > { %1078 = vst.msk [vmem:[#allocation5] sm:$0xff] %vm618_vm12, %v997_v57 }
 0x4b3   : > { %v1087_v63 = vpop.permute.xlu1 %1086 }
 0x4bf   : > { %v1081_v62 = vpop.permute.xlu0 %1080 }
 0x4c0   : > { %1084 = vst.msk [vmem:[#allocation5] sm:$0xff] %vm1083_vm1, %v1081_v62 }
 0x4c1   : > { %1090 = vst.msk [vmem:[#allocation5] sm:$0xff] %vm1089_vm2, %v1087_v63 }
 0x4c7   : > { %v1093_v0 = vpop.permute.xlu0 %1092 }
 0x4c8   : > { %1096 = vst.msk [vmem:[#allocation5] sm:$0xff] %vm1095_vm3, %v1093_v0 }
 0x4cf   : > { %v1097_v2 = vld [vmem:[#allocation5] sm:$0xff] }
 0x4d0   : > { %1287 = vmatmul.msk.f32.vlgmr.msra.gmra.mxu3 %vm518_vm0, %v1097_v2 }
 0x553   : > { %v1126_v4 = vpop.f32.mrf.mxu3 }
 0x554   : > { %v1127_v5 = vadd.f32 %v1365_v3, %v1126_v4 }
 0x556   : > { %v1129_v6 = vadd.f32 %v1127_v5, %v1669_v1 }
 0x558   : > { %1130 = vst.msk [vmem:[%s509_s23] sm:$0xff] %vm518_vm0, %v1129_v6 }
 0x559 PF: > { %s1829_s28 = sld [smem:[#allocation14_spill]]  ;;  %s1831_s22 = smov %s1833_s15 }
 0x55a   : > { %s1830_s21 = sld [smem:[#allocation13_spill]] }
 0x55f   : > { %s24_s23 = sadd.s32 1, %s1829_s28  }
 0x560   : > { %p21_p8 = scmp.ge.s32.totalorder %s24_s23, 4  }
 0x562   :  { %23 = sbr.rel (!%p21_p8) target bundleno = 5 (0x5), region = 127 }
 0x567   :  { %1156 = vsyncpa [#allocation7], 1 }
 0x568   :  { %1158 = vsyncpa [#allocation7 + $0x1], 1 }
 0x569   :  { %1159 = vsyncpa [#allocation9], 1 }

// kernel: transformer_decoder_layer.5
= control target key start
LH: loop header
LB: loop body
LE: loop exit
PB: predicated region body
PF: predicated region fallthrough
CT: control target
= control target key end

     0   :  { %vm30_vm0 = vcmask 261120   ;;  %v208_v4 = vmov 32.0   ;;  %vm143_vm8 = vcmask 523264   ;;  %s337_s0 = inlined_call_operand.vmem [shape: f32[16,32], index: 0, kind: input, shape index: {}]   ;;  %s338_s1 = inlined_call_operand.vmem [shape: f32[1,32], index: 1, kind: input, shape index: {}]   ;;  %s339_s2 = inlined_call_operand.vmem [shape: f32[1,32], index: 2, kind: input, shape index: {}]   ;;  %s340_s4 = inlined_call_operand.vmem [shape: f32[1,64], index: 4, kind: input, shape index: {}]   ;;  %s341_s3 = inlined_call_operand.vmem [shape: f32[32,64], index: 3, kind: input, shape index: {}]   ;;  %s342_s5 = inlined_call_operand.vmem [shape: f32[64,32], index: 5, kind: input, shape index: {}]   ;;  %s343_s6 = inlined_call_operand.vmem [shape: f32[1,32], index: 6, kind: input, shape index: {}]   ;;  %s344_s7 = inlined_call_operand.vmem [shape: f32[16,32], index: 7, kind: output, shape index: {}]  }
   0x1   :  { %v252_v0 = vld [vmem:[%s337_s0 + $0x8] sm:$0xff]  ;;  %v259_v2 = vld [vmem:[%s337_s0] sm:$0xff]  ;;  %202 = vrcp.f32 %v208_v4  ;;  %v95_v21 = vld [vmem:[%s341_s3 + $0x18] sm:$0xff] }
   0x2   :  { %v34_v1 = vsel %vm30_vm0, %v252_v0, 0.0  ;;  %v31_v3 = vsel %vm30_vm0, %v259_v2, 0.0  ;;  %185 = vmatpush.msra.mxu3 %v95_v21  ;;  %118 = vmatpush.msra.mxu0 %v95_v21  ;;  %v94_v22 = vld [vmem:[%s341_s3 + $0x10] sm:$0xff]  ;;  %v93_v23 = vld [vmem:[%s341_s3 + $0x8] sm:$0xff]  ;;  %v92_v24 = vld [vmem:[%s341_s3] sm:$0xff] }
   0x3   :  { %35 = vadd.xlane.f32.xlu0 %v34_v1  ;;  %v138_v28 = vld [vmem:[%s342_s5 + $0x38] sm:$0xff]  ;;  %v137_v29 = vld [vmem:[%s342_s5 + $0x30] sm:$0xff]  ;;  %v136_v30 = vld [vmem:[%s342_s5 + $0x28] sm:$0xff] }
   0x4   :  { %186 = vmatpush.msra.mxu3 %v94_v22  ;;  %119 = vmatpush.msra.mxu0 %v94_v22  ;;  %v135_v33 = vld [vmem:[%s342_s5 + $0x20] sm:$0xff]  ;;  %v134_v36 = vld [vmem:[%s342_s5 + $0x18] sm:$0xff]  ;;  %v133_v58 = vld [vmem:[%s342_s5 + $0x10] sm:$0xff] }
   0x5   :  { %189 = vmatpush.msra.mxu2 %v138_v28  ;;  %158 = vmatpush.msra.mxu1 %v138_v28  ;;  %v198_v44 = vld [vmem:[%s338_s1] ss:$0 sm:$0xff]  ;;  %v132_v59 = vld [vmem:[%s342_s5 + $0x8] sm:$0xff] }
   0x6   :  { %187 = vmatpush.msra.mxu3 %v93_v23  ;;  %120 = vmatpush.msra.mxu0 %v93_v23  ;;  %v199_v48 = vld [vmem:[%s339_s2] ss:$0 sm:$0xff] }
   0x7   :  { %v203_v5 = vpop.eup %202  ;;  %190 = vmatpush.msra.mxu2 %v137_v29  ;;  %159 = vmatpush.msra.mxu1 %v137_v29  ;;  %v131_v60 = vld [vmem:[%s342_s5] sm:$0xff] }
   0x8   :  { %v38_v6 = vmul.f32 32.0, %v203_v5  ;;  %vm42_vm1 = vweird.f32 %v203_v5  ;;  %188 = vmatpush.msra.mxu3 %v92_v24  ;;  %121 = vmatpush.msra.mxu0 %v92_v24  ;;  %v200_v61 = vld [vmem:[%s340_s4] ss:$0 sm:$0xff] }
   0x9   :  { %191 = vmatpush.msra.mxu2 %v136_v30  ;;  %160 = vmatpush.msra.mxu1 %v136_v30 }
   0xa   :  { %v39_v7 = vsub.f32 1.0, %v38_v6  ;;  %v201_v6 = vld [vmem:[%s343_s6] ss:$0 sm:$0xff] }
   0xb   :  { %32 = vadd.xlane.f32.xlu0 %v31_v3  ;;  %192 = vmatpush.msra.mxu2 %v135_v33 }
   0xc   :  { %v40_v8 = vmul.f32 %v203_v5, %v39_v7  ;;  %161 = vmatpush.msra.mxu1 %v135_v33 }
   0xd   :  { %193 = vmatpush.msra.mxu2 %v134_v36 }
   0xe   :  { %v41_v9 = vadd.f32 %v203_v5, %v40_v8  ;;  %162 = vmatpush.msra.mxu1 %v134_v36 }
   0xf   :  { %194 = vmatpush.msra.mxu2 %v133_v58 }
  0x10   :  { %v43_v10 = vsel %vm42_vm1, %v203_v5, %v41_v9  ;;  %163 = vmatpush.msra.mxu1 %v133_v58 }
  0x11   :  { %195 = vmatpush.msra.mxu2 %v132_v59 }
  0x12   :  { %164 = vmatpush.msra.mxu1 %v132_v59 }
  0x13   :  { %196 = vmatpush.msra.mxu2 %v131_v60 }
  0x14   :  { %165 = vmatpush.msra.mxu1 %v131_v60 }
  0x76   :  { %v36_v11 = vpop.xlane.xlu0 %35 }
  0x77   :  { %v45_v12 = vmul.f32 %v43_v10, %v36_v11 }
  0x79   :  { %v264_v13 = vsub.f32 %v252_v0, %v45_v12 }
  0x7b   :  { %v49_v14 = vmul.f32 %v264_v13, %v264_v13 }
  0x7d   :  { %v53_v15 = vsel %vm30_vm0, %v49_v14, 0.0 }
  0x7e   :  { %54 = vadd.xlane.f32.xlu1 %v53_v15  ;;  %v33_v16 = vpop.xlane.xlu0 %32 }
  0x7f   :  { %v44_v17 = vmul.f32 %v43_v10, %v33_v16 }
  0x81   :  { %v270_v18 = vsub.f32 %v259_v2, %v44_v17 }
  0x83   :  { %v48_v19 = vmul.f32 %v270_v18, %v270_v18 }
  0x85   :  { %v50_v20 = vsel %vm30_vm0, %v48_v19, 0.0 }
  0x86   :  { %51 = vadd.xlane.f32.xlu1 %v50_v20 }
  0xf1   :  { %v55_v25 = vpop.xlane.xlu1 %54 }
  0xf2   :  { %v57_v26 = vmul.f32 %v55_v25, %v43_v10 }
  0xf4   :  { %v59_v27 = vadd.f32 1e-05, %v57_v26 }
  0xf6   :  { %204 = vrsqrt.f32 %v59_v27  ;;  %vm76_vm3 = vweird.f32 %v59_v27 }
  0xf9   :  { %v52_v31 = vpop.xlane.xlu1 %51 }
  0xfa   :  { %v56_v32 = vmul.f32 %v52_v31, %v43_v10 }
  0xfc   :  { %v205_v34 = vpop.eup %204  ;;  %v58_v35 = vadd.f32 1e-05, %v56_v32 }
  0xfd   :  { %v71_v37 = vmul.f32 %v205_v34, %v59_v27  ;;  %vm77_vm2 = vweird.f32 %v205_v34 }
  0xfe   :  { %206 = vrsqrt.f32 %v58_v35  ;;  %vm78_vm4 = vmor %vm76_vm3, %vm77_vm2  ;;  %vm66_vm6 = vweird.f32 %v58_v35 }
  0xff   :  { %v72_v38 = vmul.f32 %v205_v34, %v71_v37 }
 0x101   :  { %v73_v39 = vmul.f32 0.5, %v72_v38 }
 0x103   :  { %v74_v40 = vsub.f32 1.5, %v73_v39 }
 0x104   :  { %v207_v41 = vpop.eup %206 }
 0x105   :  { %v75_v42 = vmul.f32 %v205_v34, %v74_v40  ;;  %v61_v43 = vmul.f32 %v207_v41, %v58_v35  ;;  %vm67_vm5 = vweird.f32 %v207_v41 }
 0x106   :  { %vm68_vm7 = vmor %vm66_vm6, %vm67_vm5 }
 0x107   :  { %v79_v45 = vsel %vm78_vm4, %v205_v34, %v75_v42  ;;  %v62_v46 = vmul.f32 %v207_v41, %v61_v43 }
 0x108   :  { %v81_v47 = vmul.f32 %v79_v45, %v264_v13 }
 0x109   :  { %v63_v49 = vmul.f32 0.5, %v62_v46 }
 0x10a   :  { %v86_v50 = vmul.f32 %v198_v44, %v81_v47 }
 0x10b   :  { %v64_v51 = vsub.f32 1.5, %v63_v49 }
 0x10c   :  { %v91_v52 = vadd.f32 %v199_v48, %v86_v50 }
 0x10d   :  { %v65_v53 = vmul.f32 %v207_v41, %v64_v51 }
 0x10e   :  { %182 = vmatmul.msk.f32.vlgmr.msra.gmra.mxu3 %vm30_vm0, %v91_v52 }
 0x10f   :  { %v69_v54 = vsel %vm68_vm7, %v207_v41, %v65_v53 }
 0x110   :  { %v80_v55 = vmul.f32 %v69_v54, %v270_v18 }
 0x112   :  { %v85_v56 = vmul.f32 %v198_v44, %v80_v55 }
 0x114   :  { %v90_v57 = vadd.f32 %v199_v48, %v85_v56 }
 0x116   :  { %181 = vmatmul.msk.f32.vlgmr.msra.gmra.mxu0 %vm30_vm0, %v90_v57 }
 0x191   :  { %v126_v62 = vpop.f32.mrf.mxu3 }
 0x192   :  { %v127_v63 = vadd.f32 %v200_v61, %v126_v62 }
 0x193   :  { %v123_v1 = vpop.f32.mrf.mxu0 }
 0x194   :  { %v130_v3 = vmax.f32 %v127_v63, 0.0  ;;  %v124_v4 = vadd.f32 %v200_v61, %v123_v1 }
 0x196   :  { %v129_v5 = vmax.f32 %v124_v4, 0.0  ;;  %184 = vmatmul.msk.f32.vlgmr.msra.gmra.mxu2 %vm143_vm8, %v130_v3 }
 0x198   :  { %183 = vmatmul.msk.f32.vlgmr.msra.gmra.mxu1 %vm143_vm8, %v129_v5 }
 0x215   :  { %v167_v7 = vpop.f32.mrf.mxu1 }
 0x216   :  { %v168_v8 = vadd.f32 %v201_v6, %v167_v7 }
 0x218   :  { %v173_v9 = vadd.f32 %v168_v8, %v259_v2 }
 0x219   :  { %v170_v10 = vpop.f32.mrf.mxu2 }
 0x21a   :  { %175 = vst.msk [vmem:[%s344_s7] sm:$0xff] %vm30_vm0, %v173_v9  ;;  %v171_v11 = vadd.f32 %v201_v6, %v170_v10 }
 0x21c   :  { %v174_v12 = vadd.f32 %v171_v11, %v252_v0 }
 0x21e   :  { %176 = vst.msk [vmem:[%s344_s7 + $0x8] sm:$0xff] %vm30_vm0, %v174_v12 }

// kernel: transformer_decoder_layer.3
= control target key start
LH: loop header
LB: loop body
LE: loop exit
PB: predicated region body
PF: predicated region fallthrough
CT: control target
= control target key end

     0   :  { %s2089_s0 = inlined_call_operand.vmem [shape: f32[2,8,32], index: 0, kind: input, shape index: {}, may-alias: {0,1}]   ;;  %s2090_s1 = inlined_call_operand.vmem [shape: f32[2,8,32], index: 1, kind: input, shape index: {}, may-alias: {0,1}]   ;;  %s2091_s2 = inlined_call_operand.hbm [shape: f32[1,32], index: 2, kind: input, shape index: {}, may-alias: {2,4}]   ;;  %s2092_s3 = inlined_call_operand.hbm [shape: f32[1,32], index: 3, kind: input, shape index: {}, may-alias: {3,5}]   ;;  %s2093_s4 = inlined_call_operand.hbm [shape: f32[1,32], index: 4, kind: input, shape index: {}, may-alias: {2,4}]   ;;  %s2094_s5 = inlined_call_operand.hbm [shape: f32[1,32], index: 5, kind: input, shape index: {}, may-alias: {3,5}]   ;;  %s2095_s6 = inlined_call_operand.vmem [shape: f32[32,32], index: 6, kind: input, shape index: {}]   ;;  %s2096_s7 = inlined_call_operand.hbm [shape: f32[1,32], index: 7, kind: input, shape index: {}]   ;;  %s2097_s8 = inlined_call_operand.hbm [shape: f32[32,64], index: 8, kind: input, shape index: {}]   ;;  %s2098_s9 = inlined_call_operand.hbm [shape: f32[1,64], index: 9, kind: input, shape index: {}]   ;;  %s2099_s10 = inlined_call_operand.hbm [shape: f32[32,32], index: 10, kind: input, shape index: {}]   ;;  %s2100_s11 = inlined_call_operand.hbm [shape: f32[1,32], index: 11, kind: input, shape index: {}]   ;;  %s2101_s12 = inlined_call_operand.vmem [shape: f32[2,8,32], index: 12, kind: output, shape index: {}]  }
   0x1   :  { %2102 = sst [smem:[#allocation25_spill]] %s2092_s3 }
   0x2   :  { %2103 = sst [smem:[#allocation26_spill]] %s2094_s5 }
   0x3   :  { %17 = vsyncpa [#allocation7], 0 }
   0x4   :  { %18 = vsyncpa [#allocation9], 0 }
   0x5   :  { %19 = vsyncpa [#allocation12], 0 }
   0x6   :  { %20 = vsyncpa [#allocation15], 0 }
   0x7   :  { %21 = vsyncpa [#allocation18], 0  ;;  %s1892_s21 = smov 0   ;;  %s1894_s22 = smov 0  }
   0x8   :  { %s1896_s23 = smov 0  }
   0x9 LB: > { %s2104_s3 = sld [smem:[#allocation25_spill]]  ;;  %s1291_s27 = sadd.s32 4294967295, %s1803_s23   ;;  %s1803_s23 = sphi %s1896_s23, %s27_s23   ;;  %s1799_s22 = sphi %s1894_s22, %s2110_s22   ;;  %s1795_s21 = sphi %s1892_s21, %s2109_s21  }
   0xa   : > { %p1293_p0 = scmp.ge.s32.totalorder %s1803_s23, 1  ;;  %p336_p1 = scmp.lt.s32.totalorder %s1803_s23, 3 }
   0xb   : > { %p1913_p2 = scmp.eq.s32.totalorder %s1291_s27, 0  ;;  %s1805_s30 = smov [#allocation8]  }
   0xc   : > { %p1917_p3 = pnand %p1293_p0, %p336_p1  ;;  %s362_s13 = sshll.u32 %s1805_s30, 4  ;;  %s363_s13 = int_to_ptr.vmem [resolvable:$true] %s362_s13 }
   0xd   : > { %s2107_s5 = sld [smem:[#allocation26_spill]]  ;;  %s410_s19 = sshll.u32 %s2097_s8, 4  ;;  %s411_s19 = int_to_ptr.hbm [resolvable:$true] %s410_s19 }
   0xe   : > { %p1370_p4 = pneg %p1917_p3  ;;  %s1806_s24 = smov [#allocation11]  }
   0xf   : > { %s360_s26 = sshll.u32 %s2104_s3, 4  ;;  %s386_s25 = sshll.u32 %s1806_s24, 4  ;;  %s361_s26 = int_to_ptr.hbm [resolvable:$true] %s360_s26  ;;  %s387_s25 = int_to_ptr.vmem [resolvable:$true] %s386_s25 }
  0x10   : > { %p1931_p5 = pnand %p1913_p2, %p1370_p4  ;;  %s1807_s27 = smov [#allocation14]  }
  0x11   : > { %s412_s30 = sshll.u32 %s1807_s27, 4  ;;  %s1808_s14 = smov 128   ;;  %s413_s30 = int_to_ptr.vmem [resolvable:$true] %s412_s30 }
  0x12   : > { %1376 = dma.hbm_to_vmem [thread:$0]  (!%p1931_p5), %s361_s26, 16, %s363_s13, [#allocation9]  }
  0x13   : > { %s384_s16 = sshll.u32 %s2107_s5, 4  ;;  %s1809_s15 = smov 8   ;;  %s385_s16 = int_to_ptr.hbm [resolvable:$true] %s384_s16 }
  0x14   : > { %1382 = dma.hbm_to_vmem [thread:$0]  (!%p1931_p5), %s385_s16, 16, %s387_s25, [#allocation12]  }
  0x15   : > { %1388 = dma.hbm_to_vmem [thread:$0]  (!%p1931_p5), %s411_s19, 512, %s413_s30, [#allocation15], %s1808_s14, %s1808_s14, %s1809_s15  }
  0x16   : > { %s436_s3 = sshll.u32 %s2099_s10, 4  ;;  %s1810_s24 = smov [#allocation17]   ;;  %s437_s3 = int_to_ptr.hbm [resolvable:$true] %s436_s3 }
  0x17   : > { %s438_s5 = sshll.u32 %s1810_s24, 4  ;;  %s348_s16 = sshll.u32 %s2091_s2, 4  ;;  %s439_s5 = int_to_ptr.vmem [resolvable:$true] %s438_s5  ;;  %s349_s16 = int_to_ptr.hbm [resolvable:$true] %s348_s16 }
  0x18   : > { %1394 = dma.hbm_to_vmem [thread:$0]  (!%p1931_p5), %s437_s3, 512, %s439_s5, [#allocation18], %s1808_s14, %s1808_s14, %s1809_s15  }
  0x19   : > { %s39_s25 = sadd.s32 1, %s1799_s22  ;;  %s1811_s19 = smov [#allocation6]  }
  0x1a   : > { %p41_p6 = scmp.ge.s32.totalorder %s39_s25, 2  ;;  %s350_s27 = sshll.u32 %s1811_s19, 4  ;;  %s351_s27 = int_to_ptr.vmem [resolvable:$true] %s350_s27 }
  0x1b   : > { %s372_s18 = sshll.u32 %s2093_s4, 4  ;;  %s399_s14 = sshll.u32 %s2096_s7, 4  ;;  %s373_s18 = int_to_ptr.hbm [resolvable:$true] %s372_s18  ;;  %s400_s14 = int_to_ptr.hbm [resolvable:$true] %s399_s14 }
  0x1c   : > { %s2112_s25 = smov (%p41_p6, %s39_s25), 0  ;;  %s1812_s15 = smov [#allocation10]  }
  0x1d   : > { %1373 = dma.hbm_to_vmem [thread:$0]  (!%p1931_p5), %s349_s16, 16, %s351_s27, [#allocation7]  }
  0x1e   : > { %s374_s24 = sshll.u32 %s1812_s15, 4  ;;  %s1813_s26 = smov [#allocation13]   ;;  %s375_s24 = int_to_ptr.vmem [resolvable:$true] %s374_s24 }
  0x1f   : > { %1379 = dma.hbm_to_vmem [thread:$0]  (!%p1931_p5), %s373_s18, 16, %s375_s24, [#allocation9]  }
  0x20   : > { %s401_s13 = sshll.u32 %s1813_s26, 4  ;;  %s425_s17 = sshll.u32 %s2098_s9, 4  ;;  %s402_s13 = int_to_ptr.vmem [resolvable:$true] %s401_s13  ;;  %s426_s17 = int_to_ptr.hbm [resolvable:$true] %s425_s17 }
  0x21   : > { %1385 = dma.hbm_to_vmem [thread:$0]  (!%p1931_p5), %s400_s14, 16, %s402_s13, [#allocation12]  }
  0x22   : > { %s451_s3 = sshll.u32 %s2100_s11, 4  ;;  %s1814_s5 = smov [#allocation16]   ;;  %s452_s3 = int_to_ptr.hbm [resolvable:$true] %s451_s3 }
  0x23   : > { %s427_s15 = sshll.u32 %s1814_s5, 4  ;;  %s1815_s18 = smov [#allocation19]   ;;  %s428_s15 = int_to_ptr.vmem [resolvable:$true] %s427_s15 }
  0x24   : > { %1391 = dma.hbm_to_vmem [thread:$0]  (!%p1931_p5), %s426_s17, 16, %s428_s15, [#allocation15]  }
  0x25   : > { %s453_s24 = sshll.u32 %s1815_s18, 4  ;;  %483 = sbr.rel (%p1917_p3) target bundleno = 1362 (0x552), region = 68  ;;  %s454_s24 = int_to_ptr.vmem [resolvable:$true] %s453_s24 }
  0x26   : > { %1397 = dma.hbm_to_vmem [thread:$0]  (!%p1931_p5), %s452_s3, 16, %s454_s24, [#allocation18]  }
  0x2a   : > { %1774 = dma.done.wait (%p1913_p2), [#allocation7], 16  }
  0x2b   : > { %1776 = vsyncadd (%p1913_p2), [#allocation7], 4294967280 }
  0x2c   : > { %1778 = dma.done.wait (%p1913_p2), [#allocation9], 32  }
  0x2d   : > { %1780 = vsyncadd (%p1913_p2), [#allocation9], 4294967264 }
  0x2e   : > { %1782 = dma.done.wait (%p1913_p2), [#allocation12], 32  }
  0x2f   : > { %1784 = vsyncadd (%p1913_p2), [#allocation12], 4294967264 }
  0x30   : > { %1786 = dma.done.wait (%p1913_p2), [#allocation15], 528  }
  0x31   : > { %1788 = vsyncadd (%p1913_p2), [#allocation15], 4294966768 }
  0x32   : > { %1790 = dma.done.wait (%p1913_p2), [#allocation18], 528  }
  0x33   : > { %1792 = vsyncadd (%p1913_p2), [#allocation18], 4294966768  ;;  %p574_p7 = scmp.lt.s32.totalorder %s1795_s21, 1  ;;  %vm599_vm0 = vcmask 261120   ;;  %v1816_v4 = vmov 32.0   ;;  %v640_v21 = vld [vmem:[#allocation14 + $0x18] sm:$0xff] }
  0x34   : > { %1469 = vrcp.f32 %v1816_v4  ;;  %660 = vmatpush.msra.mxu0 %v640_v21  ;;  %v639_v22 = vld [vmem:[#allocation14 + $0x10] sm:$0xff]  ;;  %v638_v23 = vld [vmem:[#allocation14 + $0x8] sm:$0xff]  ;;  %v637_v24 = vld [vmem:[#allocation14] sm:$0xff]  ;;  %vm668_vm8 = vcmask 64512   ;;  %s1817_s18 = smov 112   ;;  %s1818_s24 = smov 120  }
  0x35   : > { %s2114_s21 = smov (!%p574_p7, %s1795_s21), 1  ;;  %v749_v25 = vld [vmem:[%s2095_s6 + $0x18] sm:$0xff]  ;;  %v748_v26 = vld [vmem:[%s2095_s6 + $0x10] sm:$0xff]  ;;  %v747_v27 = vld [vmem:[%s2095_s6 + $0x8] sm:$0xff]  ;;  %s1819_s20 = smov 104   ;;  %vm1068_vm9 = vcmask 130112  }
  0x36   : > { %s1998_s29 = sshll.u32 %s2114_s21, 3  ;;  %661 = vmatpush.msra.mxu0 %v639_v22  ;;  %769 = vmatpush.msra.mxu1 %v749_v25  ;;  %v746_v30 = vld [vmem:[%s2095_s6] sm:$0xff]  ;;  %v1462_v43 = vld [vmem:[#allocation10] ss:$0 sm:$0xff]  ;;  %v1463_v47 = vld [vmem:[#allocation11] ss:$0 sm:$0xff] }
  0x37   : > { %s584_s26 = scalar_lea.vmem %s2090_s1, %s1998_s29  ;;  %s580_s28 = scalar_lea.vmem %s2089_s0, %s1998_s29  ;;  %v1464_v53 = vld [vmem:[#allocation6] ss:$0 sm:$0xff]  ;;  %v1465_v56 = vld [vmem:[#allocation8] ss:$0 sm:$0xff]  ;;  %v1466_v59 = vld [vmem:[#allocation16] ss:$0 sm:$0xff] }
  0x38   : > { %v596_v0 = vld [vmem:[%s584_s26] sm:$0xff]  ;;  %662 = vmatpush.msra.mxu0 %v638_v23  ;;  %770 = vmatpush.msra.mxu1 %v748_v26  ;;  %v1467_v62 = vld [vmem:[#allocation13] ss:$0 sm:$0xff]  ;;  %s1820_s14 = smov 88   ;;  %s1821_s26 = smov 80   ;;  %vm1074_vm10 = vcmask 195712  }
  0x39   : > { %v600_v1 = vsel %vm599_vm0, %v596_v0, 0.0  ;;  %v2009_v2 = vld [vmem:[%s580_s28] sm:$0xff]  ;;  %s1822_s13 = smov 72   ;;  %s1823_s19 = smov 96   ;;  %vm1080_vm11 = vcmask 261312  }
  0x3a   : > { %601 = vadd.xlane.f32.xlu0 %v600_v1  ;;  %v709_v3 = vsel %vm599_vm0, %v2009_v2, 0.0  ;;  %v1470_v5 = vpop.eup %1469  ;;  %663 = vmatpush.msra.mxu0 %v637_v24  ;;  %s1824_s28 = smov 8   ;;  %s1825_s21 = smov 24  }
  0x3b   : > { %v604_v6 = vmul.f32 32.0, %v1470_v5  ;;  %vm608_vm1 = vweird.f32 %v1470_v5  ;;  %771 = vmatpush.msra.mxu1 %v747_v27  ;;  %s1826_s30 = smov 16   ;;  %s591_s27 = scalar_lea.vmem %s2101_s12, %s1998_s29 }
  0x3d   : > { %v605_v7 = vsub.f32 1.0, %v604_v6  ;;  %772 = vmatpush.msra.mxu1 %v746_v30 }
  0x3f   : > { %v606_v8 = vmul.f32 %v1470_v5, %v605_v7 }
  0x41   : > { %v607_v9 = vadd.f32 %v1470_v5, %v606_v8 }
  0x42   : > { %710 = vadd.xlane.f32.xlu0 %v709_v3 }
  0x43   : > { %v609_v10 = vsel %vm608_vm1, %v1470_v5, %v607_v9 }
  0xad   : > { %v602_v11 = vpop.xlane.xlu0 %601 }
  0xae   : > { %v610_v12 = vmul.f32 %v609_v10, %v602_v11 }
  0xb0   : > { %v611_v13 = vsub.f32 %v596_v0, %v610_v12 }
  0xb2   : > { %v612_v14 = vmul.f32 %v611_v13, %v611_v13 }
  0xb4   : > { %v613_v15 = vsel %vm599_vm0, %v612_v14, 0.0 }
  0xb5   : > { %614 = vadd.xlane.f32.xlu1 %v613_v15  ;;  %v711_v16 = vpop.xlane.xlu0 %710 }
  0xb6   : > { %v719_v17 = vmul.f32 %v711_v16, %v609_v10 }
  0xb8   : > { %v720_v18 = vsub.f32 %v2009_v2, %v719_v17 }
  0xba   : > { %v721_v19 = vmul.f32 %v720_v18, %v720_v18 }
  0xbc   : > { %v722_v20 = vsel %vm599_vm0, %v721_v19, 0.0 }
  0xbd   : > { %723 = vadd.xlane.f32.xlu1 %v722_v20 }
 0x128   : > { %v615_v28 = vpop.xlane.xlu1 %614 }
 0x129   : > { %v616_v29 = vmul.f32 %v615_v28, %v609_v10 }
 0x12b   : > { %v617_v31 = vadd.f32 1e-05, %v616_v29 }
 0x12d   : > { %1471 = vrsqrt.f32 %v617_v31  ;;  %vm624_vm3 = vweird.f32 %v617_v31 }
 0x130   : > { %v724_v32 = vpop.xlane.xlu1 %723 }
 0x131   : > { %v725_v33 = vmul.f32 %v724_v32, %v609_v10 }
 0x133   : > { %v1472_v34 = vpop.eup %1471  ;;  %v726_v35 = vadd.f32 1e-05, %v725_v33 }
 0x134   : > { %v619_v36 = vmul.f32 %v1472_v34, %v617_v31  ;;  %vm625_vm2 = vweird.f32 %v1472_v34 }
 0x135   : > { %1473 = vrsqrt.f32 %v726_v35  ;;  %vm626_vm4 = vmor %vm624_vm3, %vm625_vm2  ;;  %vm733_vm6 = vweird.f32 %v726_v35 }
 0x136   : > { %v620_v37 = vmul.f32 %v1472_v34, %v619_v36 }
 0x138   : > { %v621_v38 = vmul.f32 0.5, %v620_v37 }
 0x13a   : > { %v622_v39 = vsub.f32 1.5, %v621_v38 }
 0x13b   : > { %v1474_v40 = vpop.eup %1473 }
 0x13c   : > { %v623_v41 = vmul.f32 %v1472_v34, %v622_v39  ;;  %v728_v42 = vmul.f32 %v1474_v40, %v726_v35  ;;  %vm734_vm5 = vweird.f32 %v1474_v40 }
 0x13d   : > { %vm735_vm7 = vmor %vm733_vm6, %vm734_vm5 }
 0x13e   : > { %v627_v44 = vsel %vm626_vm4, %v1472_v34, %v623_v41  ;;  %v729_v45 = vmul.f32 %v1474_v40, %v728_v42 }
 0x13f   : > { %v628_v46 = vmul.f32 %v627_v44, %v611_v13 }
 0x140   : > { %v730_v48 = vmul.f32 0.5, %v729_v45 }
 0x141   : > { %v632_v49 = vmul.f32 %v1462_v43, %v628_v46 }
 0x142   : > { %v731_v50 = vsub.f32 1.5, %v730_v48 }
 0x143   : > { %v636_v51 = vadd.f32 %v1463_v47, %v632_v49 }
 0x144   : > { %v732_v52 = vmul.f32 %v1474_v40, %v731_v50 }
 0x145   : > { %1317 = vmatmul.msk.f32.vlgmr.msra.gmra.mxu0 %vm599_vm0, %v636_v51 }
 0x146   : > { %v736_v54 = vsel %vm735_vm7, %v1474_v40, %v732_v52 }
 0x147   : > { %v737_v55 = vmul.f32 %v736_v54, %v720_v18 }
 0x149   : > { %v741_v57 = vmul.f32 %v1464_v53, %v737_v55 }
 0x14b   : > { %v745_v58 = vadd.f32 %v1465_v56, %v741_v57 }
 0x14d   : > { %1318 = vmatmul.msk.f32.vlgmr.msra.gmra.mxu1 %vm599_vm0, %v745_v58 }
 0x1c2   : > { %v665_v60 = vpop.f32.mrf.mxu0 }
 0x1c3   : > { %v2030_v61 = vadd.f32 %v1466_v59, %v665_v60 }
 0x1c5   : > { %685 = vrot.lane.b32.xlu0 %v2030_v61, %s1817_s18  ;;  %675 = vrot.lane.b32.xlu2 %v2030_v61, %s1818_s24  ;;  %669 = vst.msk [vmem:[#allocation3] sm:$0xff] %vm668_vm8, %v2030_v61 }
 0x1c6   : > { %695 = vrot.lane.b32.xlu1 %v2030_v61, %s1819_s20 }
 0x1ca   : > { %v774_v63 = vpop.f32.mrf.mxu1 }
 0x1cb   : > { %v775_v0 = vadd.f32 %v1467_v62, %v774_v63 }
 0x1cc   : > { %v799_v1 = vld [vmem:[#allocation3] sm:$0xff] }
 0x1cd   : > { %778 = vst.msk [vmem:[#allocation2] sm:$0xff] %vm668_vm8, %v775_v0  ;;  %1319 = vmatpush.xpose.msk.msra.mxu2 %vm668_vm8, %v799_v1  ;;  %780 = vrot.lane.b32.xlu2 %v775_v0, %s1818_s24 }
 0x1d4   : > { %v795_v3 = vld [vmem:[#allocation2] sm:$0xff] }
 0x1d5   : > { %785 = vrot.lane.b32.xlu2 %v775_v0, %s1817_s18  ;;  %1320 = vmatmul.msk.f32.vlgmr.msra.gmra.mxu2 %vm668_vm8, %v795_v3 }
 0x1dd   : > { %790 = vrot.lane.b32.xlu2 %v775_v0, %s1819_s20 }
 0x21f   : > { %v676_v4 = vpop.permute.xlu2 %675 }
 0x220   : > { %679 = vst.msk [vmem:[#allocation3 + $0x8] sm:$0xff] %vm668_vm8, %v676_v4 }
 0x227   : > { %v781_v5 = vpop.permute.xlu2 %780  ;;  %v800_v6 = vld [vmem:[#allocation3 + $0x8] sm:$0xff] }
 0x228   : > { %784 = vst.msk [vmem:[#allocation2 + $0x8] sm:$0xff] %vm668_vm8, %v781_v5  ;;  %1321 = vmatpush.xpose.msk.msra.mxu3 %vm668_vm8, %v800_v6 }
 0x22f   : > { %v786_v7 = vpop.permute.xlu2 %785  ;;  %v796_v8 = vld [vmem:[#allocation2 + $0x8] sm:$0xff] }
 0x230   : > { %789 = vst.msk [vmem:[#allocation2 + $0x10] sm:$0xff] %vm668_vm8, %v786_v7  ;;  %1322 = vmatmul.msk.f32.vlgmr.msra.gmra.mxu3 %vm668_vm8, %v796_v8 }
 0x237   : > { %v791_v9 = vpop.permute.xlu2 %790  ;;  %v686_v10 = vpop.permute.xlu0 %685  ;;  %v797_v15 = vld [vmem:[#allocation2 + $0x10] sm:$0xff] }
 0x238   : > { %794 = vst.msk [vmem:[#allocation2 + $0x18] sm:$0xff] %vm668_vm8, %v791_v9  ;;  %v696_v11 = vpop.permute.xlu1 %695 }
 0x239   : > { %699 = vst.msk [vmem:[#allocation3 + $0x18] sm:$0xff] %vm668_vm8, %v696_v11 }
 0x23a   : > { %689 = vst.msk [vmem:[#allocation3 + $0x10] sm:$0xff] %vm668_vm8, %v686_v10 }
 0x23f   : > { %v798_v14 = vld [vmem:[#allocation2 + $0x18] sm:$0xff] }
 0x240   : > { %v802_v12 = vld [vmem:[#allocation3 + $0x18] sm:$0xff] }
 0x241   : > { %v801_v13 = vld [vmem:[#allocation3 + $0x10] sm:$0xff]  ;;  %1325 = vmatpush.xpose.msk.msrb.mxu3 %vm668_vm8, %v802_v12 }
 0x242   : > { %1323 = vmatpush.xpose.msk.msrb.mxu2 %vm668_vm8, %v801_v13 }
 0x244   : > { %1326 = vmatmul.msk.f32.vlgmr.msrb.gmra.mxu3 %vm668_vm8, %v798_v14 }
 0x245   : > { %1324 = vmatmul.msk.f32.vlgmr.msrb.gmra.mxu2 %vm668_vm8, %v797_v15 }
 0x258   : > { %v826_v19 = vpop.f32.mrf.mxu2 }
 0x259   : > { %v907_v26 = vmul.f32 0.35355338, %v826_v19 }
 0x25b   : > { %v911_v27 = vsel %vm668_vm8, %v907_v26, -inf }
 0x2b3   : > { %v852_v16 = vpop.f32.mrf.mxu3 }
 0x2b4   : > { %v908_v17 = vmul.f32 0.35355338, %v852_v16 }
 0x2b6   : > { %v914_v18 = vsel %vm668_vm8, %v908_v17, -inf }
 0x2b7   : > { %915 = vmax.xlane.f32.xlu1 %v914_v18 }
 0x2c7   : > { %v904_v20 = vpop.f32.mrf.mxu3 }
 0x2c8   : > { %v878_v21 = vpop.f32.mrf.mxu2  ;;  %v910_v22 = vmul.f32 0.35355338, %v904_v20 }
 0x2c9   : > { %v909_v23 = vmul.f32 0.35355338, %v878_v21  ;;  %v1086_v21 = vld [vmem:[#allocation17 + $0x18] sm:$0xff] }
 0x2ca   : > { %v920_v24 = vsel %vm668_vm8, %v910_v22, -inf }
 0x2cb   : > { %921 = vmax.xlane.f32.xlu0 %v920_v24  ;;  %v917_v25 = vsel %vm668_vm8, %v909_v23, -inf  ;;  %v1083_v24 = vld [vmem:[#allocation17] sm:$0xff] }
 0x2cc   : > { %918 = vmax.xlane.f32.xlu2 %v917_v25 }
 0x2d4   : > { %912 = vmax.xlane.f32.xlu2 %v911_v27 }
 0x32a   : > { %v916_v28 = vpop.xlane.xlu1 %915 }
 0x32b   : > { %v924_v29 = vsub.f32 %v908_v17, %v916_v28 }
 0x32d   : > { %v929_v30 = vmul.f32 1.442695, %v924_v29  ;;  %v1468_v29 = vld [vmem:[#allocation19] ss:$0 sm:$0xff] }
 0x32f   : > { %1475 = vpow2.f32 %v929_v30 }
 0x335   : > { %v1476_v31 = vpop.eup %1475 }
 0x336   : > { %v938_v32 = vsel %vm668_vm8, %v1476_v31, 0.0 }
 0x337   : > { %939 = vadd.xlane.f32.xlu1 %v938_v32 }
 0x33e   : > { %v922_v33 = vpop.xlane.xlu0 %921 }
 0x33f   : > { %v919_v34 = vpop.xlane.xlu2 %918  ;;  %v926_v35 = vsub.f32 %v910_v22, %v922_v33  ;;  %v1085_v22 = vld [vmem:[#allocation17 + $0x10] sm:$0xff] }
 0x340   : > { %v925_v36 = vsub.f32 %v909_v23, %v919_v34  ;;  %v1084_v23 = vld [vmem:[#allocation17 + $0x8] sm:$0xff] }
 0x341   : > { %v933_v37 = vmul.f32 1.442695, %v926_v35 }
 0x342   : > { %v931_v38 = vmul.f32 1.442695, %v925_v36 }
 0x343   : > { %1477 = vpow2.f32 %v933_v37 }
 0x344   : > { %1479 = vpow2.f32 %v931_v38 }
 0x347   : > { %v913_v43 = vpop.xlane.xlu2 %912 }
 0x348   : > { %v923_v44 = vsub.f32 %v907_v26, %v913_v43 }
 0x349   : > { %v1478_v39 = vpop.eup %1477 }
 0x34a   : > { %v1480_v40 = vpop.eup %1479  ;;  %v944_v41 = vsel %vm668_vm8, %v1478_v39, 0.0  ;;  %v927_v45 = vmul.f32 1.442695, %v923_v44 }
 0x34b   : > { %v941_v42 = vsel %vm668_vm8, %v1480_v40, 0.0  ;;  %945 = vadd.xlane.f32.xlu2 %v944_v41 }
 0x34c   : > { %942 = vadd.xlane.f32.xlu0 %v941_v42  ;;  %1481 = vpow2.f32 %v927_v45 }
 0x350   : > { %680 = vrot.lane.b32.xlu1 %v2030_v61, %s1820_s14 }
 0x352   : > { %v1482_v46 = vpop.eup %1481 }
 0x353   : > { %v935_v47 = vsel %vm668_vm8, %v1482_v46, 0.0 }
 0x360   : > { %690 = vrot.lane.b32.xlu0 %v2030_v61, %s1821_s26 }
 0x363   : > { %700 = vrot.lane.b32.xlu2 %v2030_v61, %s1822_s13 }
 0x36b   : > { %671 = vrot.lane.b32.xlu2 %v2030_v61, %s1823_s19 }
 0x38a   : > { %936 = vadd.xlane.f32.xlu0 %v935_v47 }
 0x3aa   : > { %v940_v48 = vpop.xlane.xlu1 %939 }
 0x3ab   : > { %1483 = vrcp.f32 %v940_v48 }
 0x3b1   : > { %v1484_v49 = vpop.eup %1483 }
 0x3b2   : > { %v952_v50 = vmul.f32 %v1484_v49, %v940_v48 }
 0x3b4   : > { %v956_v52 = vsub.f32 2.0, %v952_v50 }
 0x3b6   : > { %v960_v56 = vmul.f32 %v1484_v49, %v956_v52 }
 0x3b8   : > { %v964_v60 = vmul.f32 %v1476_v31, %v960_v56 }
 0x3be   : > { %v946_v51 = vpop.xlane.xlu2 %945 }
 0x3bf   : > { %1485 = vrcp.f32 %v946_v51  ;;  %v943_v53 = vpop.xlane.xlu0 %942 }
 0x3c0   : > { %1487 = vrcp.f32 %v943_v53 }
 0x3c2   : > { %v681_v54 = vpop.permute.xlu1 %680 }
 0x3c3   : > { %684 = vst.msk [vmem:[#allocation4 + $0x8] sm:$0xff] %vm668_vm8, %v681_v54 }
 0x3c5   : > { %v1486_v55 = vpop.eup %1485 }
 0x3c6   : > { %v954_v57 = vmul.f32 %v1486_v55, %v946_v51  ;;  %v701_v58 = vpop.permute.xlu2 %700  ;;  %v1488_v63 = vpop.eup %1487 }
 0x3c7   : > { %704 = vst.msk [vmem:[#allocation4 + $0x18] sm:$0xff] %vm668_vm8, %v701_v58  ;;  %v953_v1 = vmul.f32 %v1488_v63, %v943_v53 }
 0x3c8   : > { %v958_v59 = vsub.f32 2.0, %v954_v57 }
 0x3c9   : > { %v957_v5 = vsub.f32 2.0, %v953_v1 }
 0x3ca   : > { %v962_v61 = vmul.f32 %v1486_v55, %v958_v59  ;;  %v968_v62 = vld [vmem:[#allocation4 + $0x8] sm:$0xff] }
 0x3cb   : > { %1012 = vmatpush.msrb.mxu1 %v968_v62  ;;  %v961_v7 = vmul.f32 %v1488_v63, %v957_v5 }
 0x3cc   : > { %1328 = vmatmul.msk.f32.vlgmr.msrb.gmra.mxu1 %vm668_vm8, %v964_v60  ;;  %v966_v0 = vmul.f32 %v1478_v39, %v962_v61 }
 0x3cd   : > { %v965_v9 = vmul.f32 %v1480_v40, %v961_v7 }
 0x3ce   : > { %v672_v3 = vpop.permute.xlu2 %671  ;;  %v970_v4 = vld [vmem:[#allocation4 + $0x18] sm:$0xff] }
 0x3cf   : > { %674 = vst.msk [vmem:[#allocation4] sm:$0xff] %vm668_vm8, %v672_v3  ;;  %1058 = vmatpush.msra.mxu3 %v970_v4 }
 0x3d0   : > { %1330 = vmatmul.msk.f32.vlgmr.msra.gmra.mxu3 %vm668_vm8, %v966_v0 }
 0x3d2   : > { %v691_v6 = vpop.permute.xlu0 %690 }
 0x3d3   : > { %694 = vst.msk [vmem:[#allocation4 + $0x10] sm:$0xff] %vm668_vm8, %v691_v6 }
 0x3d6   : > { %v967_v8 = vld [vmem:[#allocation4] sm:$0xff] }
 0x3d7   : > { %989 = vmatpush.msrb.mxu0 %v967_v8 }
 0x3d9   : > { %1106 = vmatpush.msra.mxu0 %v1086_v21 }
 0x3da   : > { %v969_v10 = vld [vmem:[#allocation4 + $0x10] sm:$0xff] }
 0x3db   : > { %1035 = vmatpush.msra.mxu2 %v969_v10  ;;  %1107 = vmatpush.msra.mxu0 %v1085_v22 }
 0x3dc   : > { %1329 = vmatmul.msk.f32.vlgmr.msra.gmra.mxu2 %vm668_vm8, %v965_v9 }
 0x3dd   : > { %1108 = vmatpush.msra.mxu0 %v1084_v23 }
 0x3df   : > { %1109 = vmatpush.msra.mxu0 %v1083_v24 }
 0x3fd   : > { %v937_v11 = vpop.xlane.xlu0 %936 }
 0x3fe   : > { %1489 = vrcp.f32 %v937_v11 }
 0x404   : > { %v1490_v12 = vpop.eup %1489 }
 0x405   : > { %v951_v13 = vmul.f32 %v1490_v12, %v937_v11 }
 0x407   : > { %v955_v14 = vsub.f32 2.0, %v951_v13 }
 0x409   : > { %v959_v15 = vmul.f32 %v1490_v12, %v955_v14 }
 0x40b   : > { %v963_v16 = vmul.f32 %v1482_v46, %v959_v15 }
 0x40d   : > { %1327 = vmatmul.msk.f32.vlgmr.msrb.gmra.mxu0 %vm668_vm8, %v963_v16 }
 0x449   : > { %v1014_v17 = vpop.f32.mrf.mxu1 }
 0x44a   : > { %1065 = vrot.lane.b32.xlu1 %v1014_v17, %s1824_s28 }
 0x453   : > { %v1060_v18 = vpop.f32.mrf.mxu3 }
 0x454   : > { %1077 = vrot.lane.b32.xlu1 %v1060_v18, %s1825_s21 }
 0x45f   : > { %v1037_v19 = vpop.f32.mrf.mxu2 }
 0x460   : > { %1071 = vrot.lane.b32.xlu2 %v1037_v19, %s1826_s30 }
 0x48a   : > { %v991_v20 = vpop.f32.mrf.mxu0 }
 0x48b   : > { %1063 = vst.msk [vmem:[#allocation5] sm:$0xff] %vm668_vm8, %v991_v20 }
 0x4ba   : > { %v1072_v26 = vpop.permute.xlu2 %1071 }
 0x4bc   : > { %v1066_v25 = vpop.permute.xlu1 %1065 }
 0x4bd   : > { %1069 = vst.msk [vmem:[#allocation5] sm:$0xff] %vm1068_vm9, %v1066_v25 }
 0x4be   : > { %1075 = vst.msk [vmem:[#allocation5] sm:$0xff] %vm1074_vm10, %v1072_v26 }
 0x4c6   : > { %v1078_v27 = vpop.permute.xlu1 %1077 }
 0x4c7   : > { %1081 = vst.msk [vmem:[#allocation5] sm:$0xff] %vm1080_vm11, %v1078_v27 }
 0x4ce   : > { %v1082_v28 = vld [vmem:[#allocation5] sm:$0xff] }
 0x4cf   : > { %1331 = vmatmul.msk.f32.vlgmr.msra.gmra.mxu0 %vm599_vm0, %v1082_v28 }
 0x54c   : > { %v1111_v30 = vpop.f32.mrf.mxu0 }
 0x54d   : > { %v1112_v31 = vadd.f32 %v1468_v29, %v1111_v30 }
 0x54f   : > { %v1114_v32 = vadd.f32 %v1112_v31, %v2009_v2 }
 0x551   : > { %1115 = vst.msk [vmem:[%s591_s27] sm:$0xff] %vm599_vm0, %v1114_v32 }
 0x552 PF: > { %s27_s23 = sadd.s32 1, %s1803_s23   ;;  %s2109_s21 = smov %s1799_s22 }
 0x553   : > { %p24_p8 = scmp.ge.s32.totalorder %s27_s23, 4   ;;  %s2110_s22 = smov %s2112_s25 }
 0x555   :  { %26 = sbr.rel (!%p24_p8) target bundleno = 9 (0x9), region = 151 }
 0x55a   :  { %1141 = vsyncpa [#allocation7], 1 }
 0x55b   :  { %1143 = vsyncpa [#allocation7 + $0x1], 1 }
 0x55c   :  { %1144 = vsyncpa [#allocation9], 1 }
 0x55d   :  { %1145 = vsyncpa [#allocation12], 1 }
 0x55e   :  { %1146 = vsyncpa [#allocation15], 1 }
 0x55f   :  { %1147 = vsyncpa [#allocation18], 1 }

</bundles_post_ra>
